<compile_context>
chip_gen: v6e
topology: v6e:2x2x1
jax: 0.10.0
libtpu: 0.0.40
codegen_flags: <defaults>
</compile_context>

<pallas_src>
import functools

import jax
import jax.numpy as jnp
import numpy as np
from jax.experimental import pallas as pl
from jax.experimental.pallas import tpu as pltpu


def _refined_reciprocal(x):
    # EUP approximate reciprocal (separate issue slot, hides under the exp
    # batches) + one Newton-Raphson step so accuracy is ~f32 without paying
    # for a full divide sequence on the VPU.
    r = pl.reciprocal(x, approx=True)
    return r * (2.0 - x * r)


def yolo_loss_kernel(cls_ref, tbox_ref, w_ref, x_ref, out_ref,
                     *, num_classes, reg_max):
    # cls_ref : SMEM (1,)       int32   target class index
    # tbox_ref: SMEM (4,)       float32 target box (x1, y1, x2, y2)
    # w_ref   : VMEM (1, TA)    float32 per-anchor weight 1/(bs*A_level), 0 on pad
    # x_ref   : VMEM (C, TA)    float32, C = 4*reg_max + num_classes (anchors on lanes)
    # out_ref : VMEM (16, TA)   float32 per-batch partial sums, resident across the
    #           anchor-tile grid axis.  rows 0..7: weighted BCE (row 0 also holds
    #           the -z[cls] one-hot correction); row 8: weighted (1 - IoU);
    #           rows 9..15: unused (zero).  Cross-lane reduce happens in the wrapper.
    nbox = 4 * reg_max
    ta = w_ref.shape[1]

    @pl.when(pl.program_id(1) == 0)
    def _():
        out_ref[...] = jnp.zeros_like(out_ref)

    w = w_ref[...]                                            # (1, TA)

    # ---- classification: BCE-with-logits vs a one-hot target ----------------
    #   sum_c BCE(z_c) = sum_c [max(z_c,0) + log(1+exp(-|z_c|))] - z_{cls}
    # Stream the class logits in 8-row sublane-aligned chunks (no (nc, TA)
    # temporary, no one-hot build); accumulate into an (8, TA) running sum.
    acc = jnp.zeros((8, ta), jnp.float32)
    full_chunks = num_classes // 8
    for c in range(full_chunks):                              # static unrolled loop
        z = x_ref[nbox + 8 * c: nbox + 8 * (c + 1), :]        # (8, TA), 8-aligned
        acc = acc + (jnp.maximum(z, 0.0) + jnp.log(1.0 + jnp.exp(-jnp.abs(z))))
    rem = num_classes - 8 * full_chunks
    if rem:                                                   # static; unused for nc=80
        z = x_ref[nbox + 8 * full_chunks: nbox + num_classes, :]
        acc = acc.at[:rem, :].add(
            jnp.maximum(z, 0.0) + jnp.log(1.0 + jnp.exp(-jnp.abs(z))))
    out_ref[0:8, :] += acc * w
    # one-hot correction: subtract the target-class row (dynamic sublane slice),
    # padded lanes are zeroed by w.
    zc = x_ref[pl.ds(nbox + cls_ref[0], 1), :]                # (1, TA)
    out_ref[0:1, :] -= zc * w

    # ---- DFL decode: softmax over reg_max bins, expected value --------------
    bins = jax.lax.broadcasted_iota(jnp.int32, (reg_max, ta), 0).astype(jnp.float32)

    def dfl_coord(k):
        d = x_ref[k * reg_max:(k + 1) * reg_max, :]           # (reg_max, TA), 8-aligned
        m = jnp.max(d, axis=0, keepdims=True)
        e = jnp.exp(d - m)
        s = jnp.sum(e, axis=0, keepdims=True)
        num = jnp.sum(e * bins, axis=0, keepdims=True)
        return num * _refined_reciprocal(s)                   # (1, TA)

    cx = dfl_coord(0)
    cy = dfl_coord(1)
    cw = dfl_coord(2)
    ch = dfl_coord(3)

    # ---- xywh -> xyxy, IoU against the (scalar) target box ------------------
    px1 = cx - 0.5 * cw
    py1 = cy - 0.5 * ch
    px2 = cx + 0.5 * cw
    py2 = cy + 0.5 * ch
    tx1 = tbox_ref[0]
    ty1 = tbox_ref[1]
    tx2 = tbox_ref[2]
    ty2 = tbox_ref[3]
    iw = jnp.maximum(jnp.minimum(px2, tx2) - jnp.maximum(px1, tx1), 0.0)
    ih = jnp.maximum(jnp.minimum(py2, ty2) - jnp.maximum(py1, ty1), 0.0)
    inter = iw * ih
    union = cw * ch + (tx2 - tx1) * (ty2 - ty1) - inter + 1e-7   # pred area = w*h
    iou = inter * _refined_reciprocal(union)
    out_ref[8:9, :] += (1.0 - iou) * w                        # padded lanes: w = 0


def _round_up(x, m):
    return ((x + m - 1) // m) * m


def _pick_anchor_tile(total_anchors):
    # Large lane-dense tiles amortize the ~0.35us/grid-step overhead; cap at
    # 1024 so the (144, TA) f32 block stays small and DFL/BCE temporaries keep
    # vreg pressure bounded on all generations (v5e/v6e/v7x).
    return min(1024, _round_up(total_anchors, 128))


def _group_loss_partials(x_levels, cls_idx, tbox, num_classes, reg_max):
    """x_levels: list of (bs, C, A_l) f32 arrays sharing bs/C.

    Returns (bs, 16, TA) weighted partial sums (see kernel docstring)."""
    bs, chans, _ = x_levels[0].shape

    # Per-anchor weights fold the per-level 1/(bs*A_l) mean normalisation and
    # the padded-lane masking into one multiply, so several levels can share a
    # single fused grid and level boundaries need not be tile-aligned.
    ws = [jnp.full((x.shape[2],), 1.0 / (bs * x.shape[2]), jnp.float32)
          for x in x_levels]
    x_cat = x_levels[0] if len(x_levels) == 1 else jnp.concatenate(x_levels, axis=2)
    w_cat = ws[0] if len(ws) == 1 else jnp.concatenate(ws)

    a_total = x_cat.shape[2]
    ta = _pick_anchor_tile(a_total)
    a_pad = _round_up(a_total, ta)
    if a_pad != a_total:
        x_cat = jnp.pad(x_cat, ((0, 0), (0, 0), (0, a_pad - a_total)))
        w_cat = jnp.pad(w_cat, (0, a_pad - a_total))
    w_cat = w_cat[None, :]                                    # (1, A_pad)
    n_tiles = a_pad // ta

    kernel = functools.partial(yolo_loss_kernel,
                               num_classes=num_classes, reg_max=reg_max)
    return pl.pallas_call(
        kernel,
        out_shape=jax.ShapeDtypeStruct((bs, 16, ta), jnp.float32),
        grid_spec=pltpu.PrefetchScalarGridSpec(
            num_scalar_prefetch=0,
            grid=(bs, n_tiles),
            in_specs=[
                pl.BlockSpec(memory_space=pltpu.MemorySpace.SMEM),        # class idx
                pl.BlockSpec(memory_space=pltpu.MemorySpace.SMEM),        # target box
                pl.BlockSpec((1, ta), lambda b, t: (0, t)),               # anchor weights
                pl.BlockSpec((None, chans, ta), lambda b, t: (b, 0, t)),  # head logits
            ],
            out_specs=pl.BlockSpec((None, 16, ta), lambda b, t: (b, 0, 0)),
        ),
        compiler_params=pltpu.CompilerParams(
            # batch axis parallel -> v7x can split it across its 2 TensorCores;
            # anchor-tile axis is the reduction axis (resident output block).
            dimension_semantics=("parallel", "arbitrary")),
    )(cls_idx, tbox, w_cat, x_cat)


def yolov8_loss_pallas(preds, targets, num_classes=80, reg_max=16,
                       max_fused_anchors=65536):
    """preds: list of (bs, 4*reg_max + nc, ny, nx) f32. Returns dict of scalars."""
    cls_idx = jnp.asarray(targets['class'], jnp.int32).reshape((1,))
    tbox = jnp.asarray(targets['boxes'], jnp.float32).reshape((4,))

    levels = []
    for pred in preds:
        bs, chans, ny, nx = pred.shape
        assert chans == 4 * reg_max + num_classes
        levels.append(pred.reshape(bs, chans, ny * nx))       # free reshape, no transpose

    total_anchors = sum(x.shape[2] for x in levels)
    # Small inputs: one fused pallas_call over all levels (launch overhead
    # dominates).  Large inputs: one call per level so the big levels never pay
    # an extra HBM concat copy.
    if total_anchors <= max_fused_anchors:
        groups = [levels]
    else:
        groups = [[x] for x in levels]

    lcls = jnp.zeros((), jnp.float32)
    lbox = jnp.zeros((), jnp.float32)
    for g in groups:
        part = _group_loss_partials(g, cls_idx, tbox, num_classes, reg_max)
        # Weights already include 1/(bs*A_level); cls additionally divides by nc.
        lcls = lcls + jnp.sum(part[:, 0:8, :]) / num_classes
        lbox = lbox + jnp.sum(part[:, 8:, :])
    return {'loss': lbox + lcls, 'box_loss': lbox, 'cls_loss': lcls}


def yolov8_loss_reference(preds, targets, num_classes=80, reg_max=16):
    """Pure-JAX reference with identical math, for correctness checking."""
    cls_idx = jnp.asarray(targets['class'], jnp.int32)
    tbox = jnp.asarray(targets['boxes'], jnp.float32).reshape((4,))
    lcls = jnp.zeros((), jnp.float32)
    lbox = jnp.zeros((), jnp.float32)
    for pred in preds:
        bs, chans, ny, nx = pred.shape
        num_anchors = ny * nx
        p = jnp.transpose(pred.reshape(bs, chans, num_anchors), (0, 2, 1))
        box_logits = p[..., :4 * reg_max].reshape(bs, num_anchors, 4, reg_max)
        cls_logits = p[..., 4 * reg_max:]
        # DFL: softmax over bins then expected value with arange weights.
        prob = jax.nn.softmax(box_logits, axis=-1)
        ev = jnp.sum(prob * jnp.arange(reg_max, dtype=jnp.float32), axis=-1)
        cx, cy, w, h = ev[..., 0], ev[..., 1], ev[..., 2], ev[..., 3]
        px1 = cx - w / 2
        py1 = cy - h / 2
        px2 = cx + w / 2
        py2 = cy + h / 2
        tx1, ty1, tx2, ty2 = tbox[0], tbox[1], tbox[2], tbox[3]
        il = jnp.maximum(px1, tx1)
        it = jnp.maximum(py1, ty1)
        ir = jnp.minimum(px2, tx2)
        ib = jnp.minimum(py2, ty2)
        inter = jnp.maximum(ir - il, 0.0) * jnp.maximum(ib - it, 0.0)
        a1 = (px2 - px1) * (py2 - py1)
        a2 = (tx2 - tx1) * (ty2 - ty1)
        iou = inter / (a1 + a2 - inter + 1e-7)
        lbox = lbox + jnp.mean(1.0 - iou)
        tcls = jnp.zeros_like(cls_logits).at[..., cls_idx].set(1.0)
        z = cls_logits
        bce = jnp.maximum(z, 0.0) - z * tcls + jnp.log(1.0 + jnp.exp(-jnp.abs(z)))
        lcls = lcls + jnp.mean(bce)
    return {'loss': lbox + lcls, 'box_loss': lbox, 'cls_loss': lcls}


if __name__ == "__main__":
    num_classes = 80
    reg_max = 16
    chans = 4 * reg_max + num_classes    # 144

    key = jax.random.PRNGKey(0)
    k1, k2 = jax.random.split(key)
    # Two detection-head levels, small shapes: (2, 144, 16, 16) and (2, 144, 8, 8)
    preds = [
        jax.random.normal(k1, (2, chans, 16, 16), jnp.float32),
        jax.random.normal(k2, (2, chans, 8, 8), jnp.float32),
    ]
    targets = {
        'class': 3,
        'boxes': jnp.array([3.0, 3.0, 11.0, 11.0], jnp.float32),   # xyxy
    }

    out = yolov8_loss_pallas(preds, targets, num_classes, reg_max)
    out = jax.tree_util.tree_map(jax.block_until_ready, out)

    ref = yolov8_loss_reference(preds, targets, num_classes, reg_max)
    # Tolerance accounts for the EUP approximate-reciprocal (+1 Newton step)
    # used for the DFL / IoU denominators and lane-partial summation order.
    for name in ('loss', 'box_loss', 'cls_loss'):
        np.testing.assert_allclose(np.asarray(out[name]), np.asarray(ref[name]),
                                   rtol=2e-3, atol=5e-5)

    print("KERNEL_OK")
</pallas_src>

<mosaic_0001>
module attributes {stable_mosaic.version = 11 : i64} {
  func.func @yolo_loss_kernel(%arg0: i32, %arg1: i32, %arg2: memref<1xi32, #tpu.memory_space<smem>>, %arg3: memref<4xf32, #tpu.memory_space<smem>>, %arg4: memref<1x384xf32, #tpu.memory_space<vmem>>, %arg5: memref<1x144x384xf32, #tpu.memory_space<vmem>>, %arg6: memref<1x16x384xf32, #tpu.memory_space<vmem>>) attributes {dimension_semantics = [#tpu.dimension_semantics<parallel>, #tpu.dimension_semantics<arbitrary>], iteration_bounds = array<i64: 2, 1>, scalar_prefetch = 0 : i64, scratch_operands = 0 : i64, tpu.core_type = #tpu.core_type<tc>, window_params = [{transform_indices = @transform_0, window_bounds = array<i64: 1>}, {transform_indices = @transform_1, window_bounds = array<i64: 4>}, {transform_indices = @transform_2, window_bounds = array<i64: 1, 384>}, {transform_indices = @transform_3, window_bounds = array<i64: 1, 144, 384>}, {transform_indices = @transform_4, window_bounds = array<i64: 1, 16, 384>}]} {
    %c0_i32 = arith.constant 0 : i32
    %0 = arith.cmpi eq, %arg1, %c0_i32 : i32
    %1 = arith.extui %0 : i1 to i32
    %c0_i32_0 = arith.constant 0 : i32
    %2 = arith.cmpi ne, %1, %c0_i32_0 : i32
    scf.if %2 {
      %cst_107 = arith.constant 0.000000e+00 : f32
      %284 = vector.broadcast %cst_107 : f32 to vector<16x384xf32>
      %c0_108 = arith.constant 0 : index
      %c0_109 = arith.constant 0 : index
      %c0_110 = arith.constant 0 : index
      %285 = vector.load %arg6[%c0_108, %c0_109, %c0_110] : memref<1x16x384xf32, #tpu.memory_space<vmem>>, vector<1x16x384xf32>
      %286 = vector.shape_cast %285 : vector<1x16x384xf32> to vector<16x384xf32>
      %287 = vector.shape_cast %284 : vector<16x384xf32> to vector<1x16x384xf32>
      tpu.vector_store %arg6[%c0_108, %c0_109, %c0_110], %287 {strides = array<i32>} : memref<1x16x384xf32, #tpu.memory_space<vmem>>, vector<1x16x384xf32>,
    } else {
    }
    %c0 = arith.constant 0 : index
    %c0_1 = arith.constant 0 : index
    %3 = vector.load %arg4[%c0, %c0_1] : memref<1x384xf32, #tpu.memory_space<vmem>>, vector<1x384xf32>
    %cst = arith.constant 0.000000e+00 : f32
    %4 = vector.broadcast %cst : f32 to vector<8x384xf32>
    %c0_2 = arith.constant 0 : index
    %c64 = arith.constant 64 : index
    %c0_3 = arith.constant 0 : index
    %5 = vector.load %arg5[%c0_2, %c64, %c0_3] : memref<1x144x384xf32, #tpu.memory_space<vmem>>, vector<1x8x384xf32>
    %6 = vector.shape_cast %5 : vector<1x8x384xf32> to vector<8x384xf32>
    %cst_4 = arith.constant 0.000000e+00 : f32
    %7 = vector.broadcast %cst_4 : f32 to vector<8x384xf32>
    %8 = arith.maximumf %6, %7 : vector<8x384xf32>
    %9 = math.absf %6 : vector<8x384xf32>
    %cst_5 = arith.constant 0.000000e+00 : f32
    %10 = vector.broadcast %cst_5 : f32 to vector<8x384xf32>
    %11 = arith.subf %10, %9 : vector<8x384xf32>
    %12 = math.exp %11 : vector<8x384xf32>
    %cst_6 = arith.constant 1.000000e+00 : f32
    %13 = vector.broadcast %cst_6 : f32 to vector<8x384xf32>
    %14 = arith.addf %13, %12 : vector<8x384xf32>
    %15 = math.log %14 : vector<8x384xf32>
    %16 = arith.addf %8, %15 : vector<8x384xf32>
    %17 = arith.addf %4, %16 : vector<8x384xf32>
    %c0_7 = arith.constant 0 : index
    %c72 = arith.constant 72 : index
    %c0_8 = arith.constant 0 : index
    %18 = vector.load %arg5[%c0_7, %c72, %c0_8] : memref<1x144x384xf32, #tpu.memory_space<vmem>>, vector<1x8x384xf32>
    %19 = vector.shape_cast %18 : vector<1x8x384xf32> to vector<8x384xf32>
    %cst_9 = arith.constant 0.000000e+00 : f32
    %20 = vector.broadcast %cst_9 : f32 to vector<8x384xf32>
    %21 = arith.maximumf %19, %20 : vector<8x384xf32>
    %22 = math.absf %19 : vector<8x384xf32>
    %cst_10 = arith.constant 0.000000e+00 : f32
    %23 = vector.broadcast %cst_10 : f32 to vector<8x384xf32>
    %24 = arith.subf %23, %22 : vector<8x384xf32>
    %25 = math.exp %24 : vector<8x384xf32>
    %cst_11 = arith.constant 1.000000e+00 : f32
    %26 = vector.broadcast %cst_11 : f32 to vector<8x384xf32>
    %27 = arith.addf %26, %25 : vector<8x384xf32>
    %28 = math.log %27 : vector<8x384xf32>
    %29 = arith.addf %21, %28 : vector<8x384xf32>
    %30 = arith.addf %17, %29 : vector<8x384xf32>
    %c0_12 = arith.constant 0 : index
    %c80 = arith.constant 80 : index
    %c0_13 = arith.constant 0 : index
    %31 = vector.load %arg5[%c0_12, %c80, %c0_13] : memref<1x144x384xf32, #tpu.memory_space<vmem>>, vector<1x8x384xf32>
    %32 = vector.shape_cast %31 : vector<1x8x384xf32> to vector<8x384xf32>
    %cst_14 = arith.constant 0.000000e+00 : f32
    %33 = vector.broadcast %cst_14 : f32 to vector<8x384xf32>
    %34 = arith.maximumf %32, %33 : vector<8x384xf32>
    %35 = math.absf %32 : vector<8x384xf32>
    %cst_15 = arith.constant 0.000000e+00 : f32
    %36 = vector.broadcast %cst_15 : f32 to vector<8x384xf32>
    %37 = arith.subf %36, %35 : vector<8x384xf32>
    %38 = math.exp %37 : vector<8x384xf32>
    %cst_16 = arith.constant 1.000000e+00 : f32
    %39 = vector.broadcast %cst_16 : f32 to vector<8x384xf32>
    %40 = arith.addf %39, %38 : vector<8x384xf32>
    %41 = math.log %40 : vector<8x384xf32>
    %42 = arith.addf %34, %41 : vector<8x384xf32>
    %43 = arith.addf %30, %42 : vector<8x384xf32>
    %c0_17 = arith.constant 0 : index
    %c88 = arith.constant 88 : index
    %c0_18 = arith.constant 0 : index
    %44 = vector.load %arg5[%c0_17, %c88, %c0_18] : memref<1x144x384xf32, #tpu.memory_space<vmem>>, vector<1x8x384xf32>
    %45 = vector.shape_cast %44 : vector<1x8x384xf32> to vector<8x384xf32>
    %cst_19 = arith.constant 0.000000e+00 : f32
    %46 = vector.broadcast %cst_19 : f32 to vector<8x384xf32>
    %47 = arith.maximumf %45, %46 : vector<8x384xf32>
    %48 = math.absf %45 : vector<8x384xf32>
    %cst_20 = arith.constant 0.000000e+00 : f32
    %49 = vector.broadcast %cst_20 : f32 to vector<8x384xf32>
    %50 = arith.subf %49, %48 : vector<8x384xf32>
    %51 = math.exp %50 : vector<8x384xf32>
    %cst_21 = arith.constant 1.000000e+00 : f32
    %52 = vector.broadcast %cst_21 : f32 to vector<8x384xf32>
    %53 = arith.addf %52, %51 : vector<8x384xf32>
    %54 = math.log %53 : vector<8x384xf32>
    %55 = arith.addf %47, %54 : vector<8x384xf32>
    %56 = arith.addf %43, %55 : vector<8x384xf32>
    %c0_22 = arith.constant 0 : index
    %c96 = arith.constant 96 : index
    %c0_23 = arith.constant 0 : index
    %57 = vector.load %arg5[%c0_22, %c96, %c0_23] : memref<1x144x384xf32, #tpu.memory_space<vmem>>, vector<1x8x384xf32>
    %58 = vector.shape_cast %57 : vector<1x8x384xf32> to vector<8x384xf32>
    %cst_24 = arith.constant 0.000000e+00 : f32
    %59 = vector.broadcast %cst_24 : f32 to vector<8x384xf32>
    %60 = arith.maximumf %58, %59 : vector<8x384xf32>
    %61 = math.absf %58 : vector<8x384xf32>
    %cst_25 = arith.constant 0.000000e+00 : f32
    %62 = vector.broadcast %cst_25 : f32 to vector<8x384xf32>
    %63 = arith.subf %62, %61 : vector<8x384xf32>
    %64 = math.exp %63 : vector<8x384xf32>
    %cst_26 = arith.constant 1.000000e+00 : f32
    %65 = vector.broadcast %cst_26 : f32 to vector<8x384xf32>
    %66 = arith.addf %65, %64 : vector<8x384xf32>
    %67 = math.log %66 : vector<8x384xf32>
    %68 = arith.addf %60, %67 : vector<8x384xf32>
    %69 = arith.addf %56, %68 : vector<8x384xf32>
    %c0_27 = arith.constant 0 : index
    %c104 = arith.constant 104 : index
    %c0_28 = arith.constant 0 : index
    %70 = vector.load %arg5[%c0_27, %c104, %c0_28] : memref<1x144x384xf32, #tpu.memory_space<vmem>>, vector<1x8x384xf32>
    %71 = vector.shape_cast %70 : vector<1x8x384xf32> to vector<8x384xf32>
    %cst_29 = arith.constant 0.000000e+00 : f32
    %72 = vector.broadcast %cst_29 : f32 to vector<8x384xf32>
    %73 = arith.maximumf %71, %72 : vector<8x384xf32>
    %74 = math.absf %71 : vector<8x384xf32>
    %cst_30 = arith.constant 0.000000e+00 : f32
    %75 = vector.broadcast %cst_30 : f32 to vector<8x384xf32>
    %76 = arith.subf %75, %74 : vector<8x384xf32>
    %77 = math.exp %76 : vector<8x384xf32>
    %cst_31 = arith.constant 1.000000e+00 : f32
    %78 = vector.broadcast %cst_31 : f32 to vector<8x384xf32>
    %79 = arith.addf %78, %77 : vector<8x384xf32>
    %80 = math.log %79 : vector<8x384xf32>
    %81 = arith.addf %73, %80 : vector<8x384xf32>
    %82 = arith.addf %69, %81 : vector<8x384xf32>
    %c0_32 = arith.constant 0 : index
    %c112 = arith.constant 112 : index
    %c0_33 = arith.constant 0 : index
    %83 = vector.load %arg5[%c0_32, %c112, %c0_33] : memref<1x144x384xf32, #tpu.memory_space<vmem>>, vector<1x8x384xf32>
    %84 = vector.shape_cast %83 : vector<1x8x384xf32> to vector<8x384xf32>
    %cst_34 = arith.constant 0.000000e+00 : f32
    %85 = vector.broadcast %cst_34 : f32 to vector<8x384xf32>
    %86 = arith.maximumf %84, %85 : vector<8x384xf32>
    %87 = math.absf %84 : vector<8x384xf32>
    %cst_35 = arith.constant 0.000000e+00 : f32
    %88 = vector.broadcast %cst_35 : f32 to vector<8x384xf32>
    %89 = arith.subf %88, %87 : vector<8x384xf32>
    %90 = math.exp %89 : vector<8x384xf32>
    %cst_36 = arith.constant 1.000000e+00 : f32
    %91 = vector.broadcast %cst_36 : f32 to vector<8x384xf32>
    %92 = arith.addf %91, %90 : vector<8x384xf32>
    %93 = math.log %92 : vector<8x384xf32>
    %94 = arith.addf %86, %93 : vector<8x384xf32>
    %95 = arith.addf %82, %94 : vector<8x384xf32>
    %c0_37 = arith.constant 0 : index
    %c120 = arith.constant 120 : index
    %c0_38 = arith.constant 0 : index
    %96 = vector.load %arg5[%c0_37, %c120, %c0_38] : memref<1x144x384xf32, #tpu.memory_space<vmem>>, vector<1x8x384xf32>
    %97 = vector.shape_cast %96 : vector<1x8x384xf32> to vector<8x384xf32>
    %cst_39 = arith.constant 0.000000e+00 : f32
    %98 = vector.broadcast %cst_39 : f32 to vector<8x384xf32>
    %99 = arith.maximumf %97, %98 : vector<8x384xf32>
    %100 = math.absf %97 : vector<8x384xf32>
    %cst_40 = arith.constant 0.000000e+00 : f32
    %101 = vector.broadcast %cst_40 : f32 to vector<8x384xf32>
    %102 = arith.subf %101, %100 : vector<8x384xf32>
    %103 = math.exp %102 : vector<8x384xf32>
    %cst_41 = arith.constant 1.000000e+00 : f32
    %104 = vector.broadcast %cst_41 : f32 to vector<8x384xf32>
    %105 = arith.addf %104, %103 : vector<8x384xf32>
    %106 = math.log %105 : vector<8x384xf32>
    %107 = arith.addf %99, %106 : vector<8x384xf32>
    %108 = arith.addf %95, %107 : vector<8x384xf32>
    %c0_42 = arith.constant 0 : index
    %c128 = arith.constant 128 : index
    %c0_43 = arith.constant 0 : index
    %109 = vector.load %arg5[%c0_42, %c128, %c0_43] : memref<1x144x384xf32, #tpu.memory_space<vmem>>, vector<1x8x384xf32>
    %110 = vector.shape_cast %109 : vector<1x8x384xf32> to vector<8x384xf32>
    %cst_44 = arith.constant 0.000000e+00 : f32
    %111 = vector.broadcast %cst_44 : f32 to vector<8x384xf32>
    %112 = arith.maximumf %110, %111 : vector<8x384xf32>
    %113 = math.absf %110 : vector<8x384xf32>
    %cst_45 = arith.constant 0.000000e+00 : f32
    %114 = vector.broadcast %cst_45 : f32 to vector<8x384xf32>
    %115 = arith.subf %114, %113 : vector<8x384xf32>
    %116 = math.exp %115 : vector<8x384xf32>
    %cst_46 = arith.constant 1.000000e+00 : f32
    %117 = vector.broadcast %cst_46 : f32 to vector<8x384xf32>
    %118 = arith.addf %117, %116 : vector<8x384xf32>
    %119 = math.log %118 : vector<8x384xf32>
    %120 = arith.addf %112, %119 : vector<8x384xf32>
    %121 = arith.addf %108, %120 : vector<8x384xf32>
    %c0_47 = arith.constant 0 : index
    %c136 = arith.constant 136 : index
    %c0_48 = arith.constant 0 : index
    %122 = vector.load %arg5[%c0_47, %c136, %c0_48] : memref<1x144x384xf32, #tpu.memory_space<vmem>>, vector<1x8x384xf32>
    %123 = vector.shape_cast %122 : vector<1x8x384xf32> to vector<8x384xf32>
    %cst_49 = arith.constant 0.000000e+00 : f32
    %124 = vector.broadcast %cst_49 : f32 to vector<8x384xf32>
    %125 = arith.maximumf %123, %124 : vector<8x384xf32>
    %126 = math.absf %123 : vector<8x384xf32>
    %cst_50 = arith.constant 0.000000e+00 : f32
    %127 = vector.broadcast %cst_50 : f32 to vector<8x384xf32>
    %128 = arith.subf %127, %126 : vector<8x384xf32>
    %129 = math.exp %128 : vector<8x384xf32>
    %cst_51 = arith.constant 1.000000e+00 : f32
    %130 = vector.broadcast %cst_51 : f32 to vector<8x384xf32>
    %131 = arith.addf %130, %129 : vector<8x384xf32>
    %132 = math.log %131 : vector<8x384xf32>
    %133 = arith.addf %125, %132 : vector<8x384xf32>
    %134 = arith.addf %121, %133 : vector<8x384xf32>
    %c0_52 = arith.constant 0 : index
    %c0_53 = arith.constant 0 : index
    %c0_54 = arith.constant 0 : index
    %135 = vector.load %arg6[%c0_52, %c0_53, %c0_54] : memref<1x16x384xf32, #tpu.memory_space<vmem>>, vector<1x8x384xf32>
    %136 = vector.shape_cast %135 : vector<1x8x384xf32> to vector<8x384xf32>
    %137 = vector.broadcast %3 : vector<1x384xf32> to vector<8x384xf32>
    %138 = arith.mulf %134, %137 : vector<8x384xf32>
    %139 = arith.addf %136, %138 : vector<8x384xf32>
    %c0_55 = arith.constant 0 : index
    %c0_56 = arith.constant 0 : index
    %c0_57 = arith.constant 0 : index
    %140 = vector.load %arg6[%c0_55, %c0_56, %c0_57] : memref<1x16x384xf32, #tpu.memory_space<vmem>>, vector<1x8x384xf32>
    %141 = vector.shape_cast %140 : vector<1x8x384xf32> to vector<8x384xf32>
    %142 = vector.shape_cast %139 : vector<8x384xf32> to vector<1x8x384xf32>
    tpu.vector_store %arg6[%c0_55, %c0_56, %c0_57], %142 {strides = array<i32>} : memref<1x16x384xf32, #tpu.memory_space<vmem>>, vector<1x8x384xf32>,
    %c0_58 = arith.constant 0 : index
    %143 = memref.load %arg2[%c0_58] : memref<1xi32, #tpu.memory_space<smem>>
    %c64_i32 = arith.constant 64 : i32
    %144 = arith.addi %c64_i32, %143 : i32
    %c0_59 = arith.constant 0 : index
    %145 = arith.index_cast %144 : i32 to index
    %c0_60 = arith.constant 0 : index
    %146 = vector.load %arg5[%c0_59, %145, %c0_60] : memref<1x144x384xf32, #tpu.memory_space<vmem>>, vector<1x1x384xf32>
    %147 = vector.shape_cast %146 : vector<1x1x384xf32> to vector<1x384xf32>
    %c0_61 = arith.constant 0 : index
    %c0_62 = arith.constant 0 : index
    %c0_63 = arith.constant 0 : index
    %148 = vector.load %arg6[%c0_61, %c0_62, %c0_63] : memref<1x16x384xf32, #tpu.memory_space<vmem>>, vector<1x1x384xf32>
    %149 = vector.shape_cast %148 : vector<1x1x384xf32> to vector<1x384xf32>
    %150 = arith.mulf %147, %3 : vector<1x384xf32>
    %151 = arith.subf %149, %150 : vector<1x384xf32>
    %c0_64 = arith.constant 0 : index
    %c0_65 = arith.constant 0 : index
    %c0_66 = arith.constant 0 : index
    %152 = vector.load %arg6[%c0_64, %c0_65, %c0_66] : memref<1x16x384xf32, #tpu.memory_space<vmem>>, vector<1x1x384xf32>
    %153 = vector.shape_cast %152 : vector<1x1x384xf32> to vector<1x384xf32>
    %154 = vector.shape_cast %151 : vector<1x384xf32> to vector<1x1x384xf32>
    tpu.vector_store %arg6[%c0_64, %c0_65, %c0_66], %154 {strides = array<i32>} : memref<1x16x384xf32, #tpu.memory_space<vmem>>, vector<1x1x384xf32>,
    %155 = tpu.iota {dimensions = array<i32: 0>} : vector<16x384xi32>
    %156 = arith.sitofp %155 : vector<16x384xi32> to vector<16x384xf32>
    %c0_67 = arith.constant 0 : index
    %c0_68 = arith.constant 0 : index
    %c0_69 = arith.constant 0 : index
    %157 = vector.load %arg5[%c0_67, %c0_68, %c0_69] : memref<1x144x384xf32, #tpu.memory_space<vmem>>, vector<1x16x384xf32>
    %158 = vector.shape_cast %157 : vector<1x16x384xf32> to vector<16x384xf32>
    %cst_70 = arith.constant dense<0xFF800000> : vector<384xf32>
    %159 = vector.multi_reduction <maximumf>, %158, %cst_70 [0] : vector<16x384xf32> to vector<384xf32>
    %160 = vector.shape_cast %159 : vector<384xf32> to vector<1x384xf32>
    %161 = vector.broadcast %160 : vector<1x384xf32> to vector<16x384xf32>
    %162 = arith.subf %158, %161 : vector<16x384xf32>
    %163 = math.exp %162 : vector<16x384xf32>
    %cst_71 = arith.constant dense<0.000000e+00> : vector<384xf32>
    %164 = vector.multi_reduction <add>, %163, %cst_71 [0] : vector<16x384xf32> to vector<384xf32>
    %165 = vector.shape_cast %164 : vector<384xf32> to vector<1x384xf32>
    %166 = arith.mulf %163, %156 : vector<16x384xf32>
    %cst_72 = arith.constant dense<0.000000e+00> : vector<384xf32>
    %167 = vector.multi_reduction <add>, %166, %cst_72 [0] : vector<16x384xf32> to vector<384xf32>
    %168 = vector.shape_cast %167 : vector<384xf32> to vector<1x384xf32>
    %169 = tpu.reciprocal %165 {approx = true} : vector<1x384xf32> -> vector<1x384xf32>
    %170 = arith.mulf %165, %169 : vector<1x384xf32>
    %cst_73 = arith.constant 2.000000e+00 : f32
    %171 = vector.broadcast %cst_73 : f32 to vector<1x384xf32>
    %172 = arith.subf %171, %170 : vector<1x384xf32>
    %173 = arith.mulf %169, %172 : vector<1x384xf32>
    %174 = arith.mulf %168, %173 : vector<1x384xf32>
    %c0_74 = arith.constant 0 : index
    %c16 = arith.constant 16 : index
    %c0_75 = arith.constant 0 : index
    %175 = vector.load %arg5[%c0_74, %c16, %c0_75] : memref<1x144x384xf32, #tpu.memory_space<vmem>>, vector<1x16x384xf32>
    %176 = vector.shape_cast %175 : vector<1x16x384xf32> to vector<16x384xf32>
    %cst_76 = arith.constant dense<0xFF800000> : vector<384xf32>
    %177 = vector.multi_reduction <maximumf>, %176, %cst_76 [0] : vector<16x384xf32> to vector<384xf32>
    %178 = vector.shape_cast %177 : vector<384xf32> to vector<1x384xf32>
    %179 = vector.broadcast %178 : vector<1x384xf32> to vector<16x384xf32>
    %180 = arith.subf %176, %179 : vector<16x384xf32>
    %181 = math.exp %180 : vector<16x384xf32>
    %cst_77 = arith.constant dense<0.000000e+00> : vector<384xf32>
    %182 = vector.multi_reduction <add>, %181, %cst_77 [0] : vector<16x384xf32> to vector<384xf32>
    %183 = vector.shape_cast %182 : vector<384xf32> to vector<1x384xf32>
    %184 = arith.mulf %181, %156 : vector<16x384xf32>
    %cst_78 = arith.constant dense<0.000000e+00> : vector<384xf32>
    %185 = vector.multi_reduction <add>, %184, %cst_78 [0] : vector<16x384xf32> to vector<384xf32>
    %186 = vector.shape_cast %185 : vector<384xf32> to vector<1x384xf32>
    %187 = tpu.reciprocal %183 {approx = true} : vector<1x384xf32> -> vector<1x384xf32>
    %188 = arith.mulf %183, %187 : vector<1x384xf32>
    %cst_79 = arith.constant 2.000000e+00 : f32
    %189 = vector.broadcast %cst_79 : f32 to vector<1x384xf32>
    %190 = arith.subf %189, %188 : vector<1x384xf32>
    %191 = arith.mulf %187, %190 : vector<1x384xf32>
    %192 = arith.mulf %186, %191 : vector<1x384xf32>
    %c0_80 = arith.constant 0 : index
    %c32 = arith.constant 32 : index
    %c0_81 = arith.constant 0 : index
    %193 = vector.load %arg5[%c0_80, %c32, %c0_81] : memref<1x144x384xf32, #tpu.memory_space<vmem>>, vector<1x16x384xf32>
    %194 = vector.shape_cast %193 : vector<1x16x384xf32> to vector<16x384xf32>
    %cst_82 = arith.constant dense<0xFF800000> : vector<384xf32>
    %195 = vector.multi_reduction <maximumf>, %194, %cst_82 [0] : vector<16x384xf32> to vector<384xf32>
    %196 = vector.shape_cast %195 : vector<384xf32> to vector<1x384xf32>
    %197 = vector.broadcast %196 : vector<1x384xf32> to vector<16x384xf32>
    %198 = arith.subf %194, %197 : vector<16x384xf32>
    %199 = math.exp %198 : vector<16x384xf32>
    %cst_83 = arith.constant dense<0.000000e+00> : vector<384xf32>
    %200 = vector.multi_reduction <add>, %199, %cst_83 [0] : vector<16x384xf32> to vector<384xf32>
    %201 = vector.shape_cast %200 : vector<384xf32> to vector<1x384xf32>
    %202 = arith.mulf %199, %156 : vector<16x384xf32>
    %cst_84 = arith.constant dense<0.000000e+00> : vector<384xf32>
    %203 = vector.multi_reduction <add>, %202, %cst_84 [0] : vector<16x384xf32> to vector<384xf32>
    %204 = vector.shape_cast %203 : vector<384xf32> to vector<1x384xf32>
    %205 = tpu.reciprocal %201 {approx = true} : vector<1x384xf32> -> vector<1x384xf32>
    %206 = arith.mulf %201, %205 : vector<1x384xf32>
    %cst_85 = arith.constant 2.000000e+00 : f32
    %207 = vector.broadcast %cst_85 : f32 to vector<1x384xf32>
    %208 = arith.subf %207, %206 : vector<1x384xf32>
    %209 = arith.mulf %205, %208 : vector<1x384xf32>
    %210 = arith.mulf %204, %209 : vector<1x384xf32>
    %c0_86 = arith.constant 0 : index
    %c48 = arith.constant 48 : index
    %c0_87 = arith.constant 0 : index
    %211 = vector.load %arg5[%c0_86, %c48, %c0_87] : memref<1x144x384xf32, #tpu.memory_space<vmem>>, vector<1x16x384xf32>
    %212 = vector.shape_cast %211 : vector<1x16x384xf32> to vector<16x384xf32>
    %cst_88 = arith.constant dense<0xFF800000> : vector<384xf32>
    %213 = vector.multi_reduction <maximumf>, %212, %cst_88 [0] : vector<16x384xf32> to vector<384xf32>
    %214 = vector.shape_cast %213 : vector<384xf32> to vector<1x384xf32>
    %215 = vector.broadcast %214 : vector<1x384xf32> to vector<16x384xf32>
    %216 = arith.subf %212, %215 : vector<16x384xf32>
    %217 = math.exp %216 : vector<16x384xf32>
    %cst_89 = arith.constant dense<0.000000e+00> : vector<384xf32>
    %218 = vector.multi_reduction <add>, %217, %cst_89 [0] : vector<16x384xf32> to vector<384xf32>
    %219 = vector.shape_cast %218 : vector<384xf32> to vector<1x384xf32>
    %220 = arith.mulf %217, %156 : vector<16x384xf32>
    %cst_90 = arith.constant dense<0.000000e+00> : vector<384xf32>
    %221 = vector.multi_reduction <add>, %220, %cst_90 [0] : vector<16x384xf32> to vector<384xf32>
    %222 = vector.shape_cast %221 : vector<384xf32> to vector<1x384xf32>
    %223 = tpu.reciprocal %219 {approx = true} : vector<1x384xf32> -> vector<1x384xf32>
    %224 = arith.mulf %219, %223 : vector<1x384xf32>
    %cst_91 = arith.constant 2.000000e+00 : f32
    %225 = vector.broadcast %cst_91 : f32 to vector<1x384xf32>
    %226 = arith.subf %225, %224 : vector<1x384xf32>
    %227 = arith.mulf %223, %226 : vector<1x384xf32>
    %228 = arith.mulf %222, %227 : vector<1x384xf32>
    %cst_92 = arith.constant 5.000000e-01 : f32
    %229 = vector.broadcast %cst_92 : f32 to vector<1x384xf32>
    %230 = arith.mulf %229, %210 : vector<1x384xf32>
    %231 = arith.subf %174, %230 : vector<1x384xf32>
    %cst_93 = arith.constant 5.000000e-01 : f32
    %232 = vector.broadcast %cst_93 : f32 to vector<1x384xf32>
    %233 = arith.mulf %232, %228 : vector<1x384xf32>
    %234 = arith.subf %192, %233 : vector<1x384xf32>
    %cst_94 = arith.constant 5.000000e-01 : f32
    %235 = vector.broadcast %cst_94 : f32 to vector<1x384xf32>
    %236 = arith.mulf %235, %210 : vector<1x384xf32>
    %237 = arith.addf %174, %236 : vector<1x384xf32>
    %cst_95 = arith.constant 5.000000e-01 : f32
    %238 = vector.broadcast %cst_95 : f32 to vector<1x384xf32>
    %239 = arith.mulf %238, %228 : vector<1x384xf32>
    %240 = arith.addf %192, %239 : vector<1x384xf32>
    %c0_96 = arith.constant 0 : index
    %241 = memref.load %arg3[%c0_96] : memref<4xf32, #tpu.memory_space<smem>>
    %c1 = arith.constant 1 : index
    %242 = memref.load %arg3[%c1] : memref<4xf32, #tpu.memory_space<smem>>
    %c2 = arith.constant 2 : index
    %243 = memref.load %arg3[%c2] : memref<4xf32, #tpu.memory_space<smem>>
    %c3 = arith.constant 3 : index
    %244 = memref.load %arg3[%c3] : memref<4xf32, #tpu.memory_space<smem>>
    %245 = vector.broadcast %243 : f32 to vector<1x384xf32>
    %246 = arith.minimumf %237, %245 : vector<1x384xf32>
    %247 = vector.broadcast %241 : f32 to vector<1x384xf32>
    %248 = arith.maximumf %231, %247 : vector<1x384xf32>
    %249 = arith.subf %246, %248 : vector<1x384xf32>
    %cst_97 = arith.constant 0.000000e+00 : f32
    %250 = vector.broadcast %cst_97 : f32 to vector<1x384xf32>
    %251 = arith.maximumf %249, %250 : vector<1x384xf32>
    %252 = vector.broadcast %244 : f32 to vector<1x384xf32>
    %253 = arith.minimumf %240, %252 : vector<1x384xf32>
    %254 = vector.broadcast %242 : f32 to vector<1x384xf32>
    %255 = arith.maximumf %234, %254 : vector<1x384xf32>
    %256 = arith.subf %253, %255 : vector<1x384xf32>
    %cst_98 = arith.constant 0.000000e+00 : f32
    %257 = vector.broadcast %cst_98 : f32 to vector<1x384xf32>
    %258 = arith.maximumf %256, %257 : vector<1x384xf32>
    %259 = arith.mulf %251, %258 : vector<1x384xf32>
    %260 = arith.mulf %210, %228 : vector<1x384xf32>
    %261 = arith.subf %243, %241 : f32
    %262 = arith.subf %244, %242 : f32
    %263 = arith.mulf %261, %262 : f32
    %264 = vector.broadcast %263 : f32 to vector<1x384xf32>
    %265 = arith.addf %260, %264 : vector<1x384xf32>
    %266 = arith.subf %265, %259 : vector<1x384xf32>
    %cst_99 = arith.constant 1.000000e-07 : f32
    %267 = vector.broadcast %cst_99 : f32 to vector<1x384xf32>
    %268 = arith.addf %266, %267 : vector<1x384xf32>
    %269 = tpu.reciprocal %268 {approx = true} : vector<1x384xf32> -> vector<1x384xf32>
    %270 = arith.mulf %268, %269 : vector<1x384xf32>
    %cst_100 = arith.constant 2.000000e+00 : f32
    %271 = vector.broadcast %cst_100 : f32 to vector<1x384xf32>
    %272 = arith.subf %271, %270 : vector<1x384xf32>
    %273 = arith.mulf %269, %272 : vector<1x384xf32>
    %274 = arith.mulf %259, %273 : vector<1x384xf32>
    %c0_101 = arith.constant 0 : index
    %c8 = arith.constant 8 : index
    %c0_102 = arith.constant 0 : index
    %275 = vector.load %arg6[%c0_101, %c8, %c0_102] : memref<1x16x384xf32, #tpu.memory_space<vmem>>, vector<1x1x384xf32>
    %276 = vector.shape_cast %275 : vector<1x1x384xf32> to vector<1x384xf32>
    %cst_103 = arith.constant 1.000000e+00 : f32
    %277 = vector.broadcast %cst_103 : f32 to vector<1x384xf32>
    %278 = arith.subf %277, %274 : vector<1x384xf32>
    %279 = arith.mulf %278, %3 : vector<1x384xf32>
    %280 = arith.addf %276, %279 : vector<1x384xf32>
    %c0_104 = arith.constant 0 : index
    %c8_105 = arith.constant 8 : index
    %c0_106 = arith.constant 0 : index
    %281 = vector.load %arg6[%c0_104, %c8_105, %c0_106] : memref<1x16x384xf32, #tpu.memory_space<vmem>>, vector<1x1x384xf32>
    %282 = vector.shape_cast %281 : vector<1x1x384xf32> to vector<1x384xf32>
    %283 = vector.shape_cast %280 : vector<1x384xf32> to vector<1x1x384xf32>
    tpu.vector_store %arg6[%c0_104, %c8_105, %c0_106], %283 {strides = array<i32>} : memref<1x16x384xf32, #tpu.memory_space<vmem>>, vector<1x1x384xf32>,
    return
  }
  func.func @transform_0(%arg0: i32, %arg1: i32) -> i32 {
    %c0_i32 = arith.constant 0 : i32
    %c0_i32_0 = arith.constant 0 : i32
    return %c0_i32 : i32
  }
  func.func @transform_1(%arg0: i32, %arg1: i32) -> i32 {
    %c0_i32 = arith.constant 0 : i32
    %c0_i32_0 = arith.constant 0 : i32
    return %c0_i32 : i32
  }
  func.func @transform_2(%arg0: i32, %arg1: i32) -> (i32, i32) {
    %c0_i32 = arith.constant 0 : i32
    %c0_i32_0 = arith.constant 0 : i32
    return %c0_i32, %arg1 : i32, i32
  }
  func.func @transform_3(%arg0: i32, %arg1: i32) -> (i32, i32, i32) {
    %c0_i32 = arith.constant 0 : i32
    %c0_i32_0 = arith.constant 0 : i32
    return %arg0, %c0_i32, %arg1 : i32, i32, i32
  }
  func.func @transform_4(%arg0: i32, %arg1: i32) -> (i32, i32, i32) {
    %c0_i32 = arith.constant 0 : i32
    %c0_i32_0 = arith.constant 0 : i32
    %c0_i32_1 = arith.constant 0 : i32
    return %arg0, %c0_i32, %c0_i32_0 : i32, i32, i32
  }
}

</mosaic_0001>

<bundles_post_ra>
// kernel: tpu_custom_call.1
= control target key start
LH: loop header
LB: loop body
LE: loop exit
PB: predicated region body
PF: predicated region fallthrough
CT: control target
= control target key end

     0   :  { %s2525_s0 = inlined_call_operand.<no memory space> [shape: s32[1], index: 0, kind: input, shape index: {}]   ;;  %s2526_s1 = inlined_call_operand.hbm [shape: f32[4], index: 1, kind: input, shape index: {}]   ;;  %s2527_s2 = inlined_call_operand.vmem [shape: f32[1,384], index: 2, kind: input, shape index: {}]   ;;  %s2528_s3 = inlined_call_operand.hbm [shape: f32[2,144,384], index: 3, kind: input, shape index: {}]   ;;  %s2529_s4 = inlined_call_operand.hbm [shape: f32[2,16,384], index: 4, kind: output, shape index: {}]  }
   0x1   :  { %9 = sst [smem:[#allocation2]] %s2525_s0 }
   0x2   :  { %10 = vsyncpa [#allocation6], 0 }
   0x3   :  { %11 = vsyncpa [#allocation4], 0 }
   0x4   :  { %13 = vsyncpa [#allocation4 + $0x1], 0 }
   0x5   :  { %14 = vsyncpa [#allocation5], 0 }
   0x6   :  { %16 = vsyncpa [#allocation5 + $0x1], 0  ;;  %s1800_s17 = smov 0   ;;  %s1802_s18 = smov 0  }
   0x7   :  { %s1804_s19 = smov 0   ;;  %s1806_s20 = smov 0  }
   0x8   :  { %s1808_s21 = smov 0   ;;  %s1810_s22 = smov 0  }
   0x9 LB: > { %2532 = sst [smem:[#allocation12_spill]] %s1761_s22  ;;  %s1338_s0 = sadd.s32 4294967295, %s1761_s22   ;;  %s1761_s22 = sphi %s1810_s22, %s22_s22   ;;  %s1757_s21 = sphi %s1808_s21, %s2550_s21   ;;  %s1753_s20 = sphi %s1806_s20, %s2549_s20   ;;  %s1749_s19 = sphi %s1804_s19, %s2548_s19   ;;  %s1745_s18 = sphi %s1802_s18, %s2547_s18   ;;  %s1741_s17 = sphi %s1800_s17, %s2546_s17  }
   0xa   : > { %s1339_s23 = sadd.s32 4294967294, %s1761_s22   ;;  %s111_s24 = sadd.s32 1, %s1749_s19 }
   0xb   : > { %p118_p0 = scmp.ne.s32.totalorder %s1749_s19, %s1745_s18  ;;  %p119_p1 = scmp.eq.s32.totalorder %s1761_s22, 0 }
   0xc   : > { %p124_p2 = scmp.ne.s32.totalorder %s1745_s18, %s1741_s17  ;;  %p1838_p3 = scmp.eq.s32.totalorder %s1338_s0, 0 }
   0xd   : > { %p148_p4 = scmp.eq.s32.totalorder %s1338_s0, 1  ;;  %p120_p5 = por %p119_p1, %p118_p0 }
   0xe   : > { %p154_p6 = scmp.eq.s32.totalorder %s1339_s23, 1  ;;  %p1844_p7 = por %p1838_p3, %p124_p2 }
   0xf   : > { %p1848_p8 = por %p148_p4, %p118_p0  ;;  %p1340_p10 = scmp.ge.s32.totalorder %s1761_s22, 1 }
  0x10   : > { %p1852_p9 = por %p154_p6, %p124_p2  ;;  %p161_p11 = scmp.lt.s32.totalorder %s1761_s22, 3 }
  0x11   : > { %p1382_p1 = scmp.lt.s32.totalorder %s1761_s22, 2  ;;  %s194_s30 = sand.u32 1, %s1749_s19  }
  0x12   : > { %s2536_s28 = scalar_select %p1852_p9, 1, 0 }
  0x13   : > { %p1859_p13 = pnand %p1340_p10, %p161_p11  ;;  %p1867_p2 = pnand %p1382_p1, %p120_p5 }
  0x14   : > { %s34_s6 = sadd.s32 1, %s1757_s21  ;;  %s1356_s7 = smul.u32 432, %s194_s30 }
  0x15   : > { %p1369_p0 = pneg %p1859_p13  ;;  %p36_p6 = scmp.ge.s32.totalorder %s34_s6, 2 }
  0x16   : > { %s1763_s8 = smov [#allocation3]   ;;  %s1357_s11 = smul.u32 6912, %s1757_s21 }
  0x17   : > { %p1370_p4 = pnand %p1369_p0, %p1838_p3  ;;  %s2552_s6 = smov (%p36_p6, %s34_s6), 0 }
  0x18   : > { %s106_s12 = ssub.s32 %s1757_s21, %s2552_s6  ;;  %s198_s13 = scalar_lea.vmem [#allocation7], %s1356_s7 }
  0x19   : > { %1372 = dma.hbm_to_smem (!%p1370_p4), %s2526_s1, 16, %s1763_s8, [#allocation6]  }
  0x1a   : > { %s207_s14 = sshll.u32 %s198_s13, 4  ;;  %p109_p5 = scmp.eq.s32.totalorder %s106_s12, 0  ;;  %s208_s14 = int_to_ptr.vmem [resolvable:$true] %s207_s14 }
  0x1b   : > { %s206_s0 = scalar_lea.hbm %s2528_s3, %s1357_s11  ;;  %s195_s22 = scalar_lea.sflag [#allocation4], %s194_s30 }
  0x1c   : > { %s1888_s23 = scalar_select %p109_p5, %s1749_s19, %s111_s24  }
  0x1d   : > { %p1651_p10 = pneg %p1867_p2  ;;  %s1662_s8 = scalar_lea.vmem %s208_s14, 6912 }
  0x1e   : > { %p1663_p11 = scmp.ne.s32.totalorder %s208_s14, %s1662_s8  ;;  %s1764_s9 = smov [#allocation7]  }
  0x1f   : > { %s1667_s10 = sshll.u32 %s1764_s9, 4  ;;  %s1668_s10 = int_to_ptr.vmem [resolvable:$false] %s1667_s10 }
  0x20   : > { %p1665_p1 = pnand %p1663_p11, %p1651_p10  ;;  %s1669_s7 = scalar_lea.vmem %s1668_s10, 13824 }
  0x21   : > { %p1670_p4 = scmp.lt.s32.totalorder %s208_s14, %s1668_s10  ;;  %p1671_p6 = scmp.lt.s32.totalorder %s1669_s7, %s1662_s8 }
  0x22   : > { %p1666_p0 = pneg %p1665_p1 }
  0x23   : > { %p1672_p12 = por %p1671_p6, %p1670_p4 }
  0x25   : > { %p1673_p9 = pnand %p1672_p12, %p1666_p0 }
  0x27   : > { %1676 = shalt.err (!%p1673_p9)
}
  0x28   : > { %s1765_s11 = smov 384   ;;  %s1766_s24 = smov 24  }
  0x29   : > { %1376 = dma.hbm_to_vmem [thread:$0]  (!%p1867_p2), %s206_s0, 6912, %s208_s14, %s195_s22, %s1765_s11, %s1765_s11, %s1766_s24  }
  0x2a   : > { %219 = sbr.rel (%p1859_p13) target bundleno = 317 (0x13d), region = 36 }
  0x2f   : > { %1728 = dma.done.wait (%p1838_p3), [#allocation6], 16  }
  0x30   : > { %1730 = vsyncadd (%p1838_p3), [#allocation6], 4294967280  ;;  %s1901_s30 = sand.u32 1, %s1745_s18  }
  0x31   : > { %s1358_s12 = smul.u32 432, %s1901_s30  ;;  %s226_s13 = scalar_lea.sflag [#allocation4], %s1901_s30 }
  0x33   : > { %s1905_s15 = scalar_lea.vmem [#allocation7], %s1358_s12 }
  0x34   : > { %1732 = dma.done.wait (%p1844_p7), %s226_s13, 6912  }
  0x35   : > { %1734 = vsyncadd (%p1844_p7), %s226_s13, 4294960384 }
  0x36   : > { %234 = sfence }
  0x37   : > { %s1359_s22 = smul.u32 48, %s1901_s30  ;;  %v1913_v0 = vld [vmem:[%s1905_s15 + $0xc0] sm:$0xff]  ;;  %v1916_v1 = vld [vmem:[%s1905_s15 + $0xc8] sm:$0xff]  ;;  %v1919_v2 = vld [vmem:[%s1905_s15 + $0xd0] sm:$0xff]  ;;  %v1767_v7 = vmov 0.0   ;;  %s2101_s26 = sld [smem:[#allocation2]] }
  0x38   : > { %v282_v3 = vand.u32 2147483647, %v1913_v0  ;;  %v1923_v4 = vld [vmem:[%s1905_s15 + $0xd8] sm:$0xff]  ;;  %v283_v5 = vand.u32 2147483647, %v1916_v1  ;;  %v1933_v9 = vld [vmem:[%s1905_s15 + $0xe0] sm:$0xff] }
  0x39   : > { %v284_v6 = vand.u32 2147483647, %v1919_v2  ;;  %s1927_s25 = scalar_lea.vmem [#allocation8], %s1359_s22  ;;  %v1936_v10 = vld [vmem:[%s1905_s15 + $0xe8] sm:$0xff]  ;;  %v315_v11 = vand.u32 2147483647, %v1923_v4 }
  0x3a   : > { %272 = vst [vmem:[%s1927_s25 + $0x18] sm:$0xff] %v1767_v7  ;;  %273 = vst [vmem:[%s1927_s25 + $0x20] sm:$0xff] %v1767_v7  ;;  %v285_v8 = vsub.f32 0.0, %v282_v3  ;;  %v286_v12 = vsub.f32 0.0, %v283_v5  ;;  %v316_v15 = vand.u32 2147483647, %v1933_v9 }
  0x3b   : > { %274 = vst [vmem:[%s1927_s25 + $0x28] sm:$0xff] %v1767_v7  ;;  %v287_v13 = vsub.f32 0.0, %v284_v6  ;;  %v317_v16 = vand.u32 2147483647, %v1936_v10  ;;  %v318_v19 = vsub.f32 0.0, %v315_v11  ;;  %v1942_v20 = vld [vmem:[%s1905_s15 + $0xf0] sm:$0xff] }
  0x3c   : > { %v288_v14 = vmul.f32 1.442695, %v285_v8  ;;  %v290_v17 = vmul.f32 1.442695, %v286_v12  ;;  %v319_v21 = vsub.f32 0.0, %v316_v15  ;;  %v1945_v23 = vld [vmem:[%s1905_s15 + $0xf8] sm:$0xff] }
  0x3d   : > { %v292_v18 = vmul.f32 1.442695, %v287_v13  ;;  %v320_v22 = vsub.f32 0.0, %v317_v16  ;;  %v1948_v24 = vld [vmem:[%s1905_s15 + $0x100] sm:$0xff]  ;;  %v321_v25 = vmul.f32 1.442695, %v318_v19 }
  0x3e   : > { %1440 = vpow2.f32 %v288_v14  ;;  %v1951_v26 = vld [vmem:[%s1905_s15 + $0x108] sm:$0xff]  ;;  %v323_v27 = vmul.f32 1.442695, %v319_v21  ;;  %v348_v29 = vand.u32 2147483647, %v1942_v20  ;;  %v1957_v32 = vld [vmem:[%s1905_s15 + $0x110] sm:$0xff] }
  0x3f   : > { %1442 = vpow2.f32 %v290_v17  ;;  %v325_v28 = vmul.f32 1.442695, %v320_v22  ;;  %v349_v30 = vand.u32 2147483647, %v1945_v23  ;;  %v350_v31 = vand.u32 2147483647, %v1948_v24 }
  0x40   : > { %1444 = vpow2.f32 %v292_v18  ;;  %v1960_v33 = vld [vmem:[%s1905_s15 + $0x118] sm:$0xff]  ;;  %v351_v34 = vsub.f32 0.0, %v348_v29  ;;  %v381_v37 = vand.u32 2147483647, %v1951_v26  ;;  %v1964_v38 = vld [vmem:[%s1905_s15 + $0x120] sm:$0xff]  ;;  %v1970_v49 = vld [vmem:[%s1905_s15 + $0x128] sm:$0xff] }
  0x41   : > { %1446 = vpow2.f32 %v321_v25  ;;  %v352_v35 = vsub.f32 0.0, %v349_v30  ;;  %v353_v36 = vsub.f32 0.0, %v350_v31  ;;  %v382_v40 = vand.u32 2147483647, %v1957_v32  ;;  %v1973_v50 = vld [vmem:[%s1905_s15 + $0x130] sm:$0xff]  ;;  %v1978_v61 = vld [vmem:[%s1905_s15 + $0x138] sm:$0xff] }
  0x42   : > { %1448 = vpow2.f32 %v323_v27  ;;  %v354_v39 = vmul.f32 1.442695, %v351_v34  ;;  %v383_v41 = vand.u32 2147483647, %v1960_v33  ;;  %v384_v44 = vsub.f32 0.0, %v381_v37  ;;  %v1981_v7 = vld [vmem:[%s1905_s15 + $0x140] sm:$0xff] }
  0x43   : > { %1450 = vpow2.f32 %v325_v28  ;;  %v356_v42 = vmul.f32 1.442695, %v352_v35  ;;  %v358_v43 = vmul.f32 1.442695, %v353_v36  ;;  %v385_v45 = vsub.f32 0.0, %v382_v40  ;;  %v1984_v13 = vld [vmem:[%s1905_s15 + $0x148] sm:$0xff] }
  0x44   : > { %1452 = vpow2.f32 %v354_v39  ;;  %v386_v46 = vsub.f32 0.0, %v383_v41  ;;  %v387_v47 = vmul.f32 1.442695, %v384_v44  ;;  %v414_v48 = vand.u32 2147483647, %v1964_v38  ;;  %v1988_v16 = vld [vmem:[%s1905_s15 + $0x150] sm:$0xff] }
  0x45   : > { %1454 = vpow2.f32 %v356_v42  ;;  %v389_v52 = vmul.f32 1.442695, %v385_v45  ;;  %v415_v55 = vand.u32 2147483647, %v1970_v49  ;;  %v416_v57 = vand.u32 2147483647, %v1973_v50 }
  0x46   : > { %1456 = vpow2.f32 %v358_v43  ;;  %v417_v51 = vsub.f32 0.0, %v414_v48  ;;  %v391_v54 = vmul.f32 1.442695, %v386_v46  ;;  %v447_v14 = vand.u32 2147483647, %v1978_v61  ;;  %v1992_v19 = vld [vmem:[%s1905_s15 + $0x158] sm:$0xff] }
  0x47   : > { %1458 = vpow2.f32 %v387_v47  ;;  %v418_v6 = vsub.f32 0.0, %v415_v55  ;;  %v419_v12 = vsub.f32 0.0, %v416_v57  ;;  %v448_v18 = vand.u32 2147483647, %v1981_v7  ;;  %v1997_v31 = vld [vmem:[%s1905_s15 + $0x168] sm:$0xff]  ;;  %v2000_v36 = vld [vmem:[%s1905_s15 + $0x160] sm:$0xff] }
  0x48   : > { %v420_v58 = vmul.f32 1.442695, %v417_v51  ;;  %1460 = vpow2.f32 %v389_v52  ;;  %v449_v25 = vand.u32 2147483647, %v1984_v13  ;;  %v450_v29 = vsub.f32 0.0, %v447_v14  ;;  %v2004_v44 = vld [vmem:[%s1905_s15 + $0x170] sm:$0xff] }
  0x49   : > { %1462 = vpow2.f32 %v391_v54  ;;  %v422_v22 = vmul.f32 1.442695, %v418_v6  ;;  %v424_v28 = vmul.f32 1.442695, %v419_v12  ;;  %v480_v30 = vand.u32 2147483647, %v1988_v16 }
  0x4a   : > { %1464 = vpow2.f32 %v420_v58  ;;  %v481_v37 = vand.u32 2147483647, %v1992_v19  ;;  %v451_v41 = vsub.f32 0.0, %v448_v18  ;;  %v452_v43 = vsub.f32 0.0, %v449_v25  ;;  %v2009_v51 = vld [vmem:[%s1905_s15 + $0x178] sm:$0xff]  ;;  %v2012_v54 = vld [vmem:[%s1905_s15 + $0x180] sm:$0xff] }
  0x4b   : > { %v1441_v53 = vpop.eup %1440  ;;  %v513_v45 = vand.u32 2147483647, %v1997_v31  ;;  %v453_v46 = vmul.f32 1.442695, %v450_v29  ;;  %v482_v47 = vand.u32 2147483647, %v2000_v36 }
  0x4c   : > { %v1443_v56 = vpop.eup %1442  ;;  %v294_v60 = vadd.f32 1.0, %v1441_v53  ;;  %v483_v48 = vsub.f32 0.0, %v480_v30  ;;  %v484_v53 = vsub.f32 0.0, %v481_v37  ;;  %v455_v55 = vmul.f32 1.442695, %v451_v41  ;;  %v2016_v57 = vld [vmem:[%s1905_s15 + $0x188] sm:$0xff] }
  0x4d   : > { %v1445_v59 = vpop.eup %1444  ;;  %v295_v63 = vadd.f32 1.0, %v1443_v56  ;;  %v514_v56 = vand.u32 2147483647, %v2004_v44  ;;  %v546_v6 = vand.u32 2147483647, %v2012_v54  ;;  %v2022_v18 = vld [vmem:[%s1905_s15 + $0x190] sm:$0xff] }
  0x4e   : > { %v1447_v62 = vpop.eup %1446  ;;  %v296_v5 = vadd.f32 1.0, %v1445_v59  ;;  %1466 = vlog2.f32 %v294_v60  ;;  %v457_v59 = vmul.f32 1.442695, %v452_v43  ;;  %v515_v60 = vand.u32 2147483647, %v2009_v51  ;;  %s635_s14 = sadd.s32 64, %s2101_s26 }
  0x4f   : > { %v1449_v3 = vpop.eup %1448  ;;  %v327_v11 = vadd.f32 1.0, %v1447_v62  ;;  %1468 = vlog2.f32 %v295_v63  ;;  %v516_v62 = vsub.f32 0.0, %v513_v45  ;;  %v547_v12 = vand.u32 2147483647, %v2016_v57  ;;  %s2145_s16 = sshra.s32 %s635_s14, 3  ;;  %s639_s8 = sand.u32 7, %s635_s14 }
  0x50   : > { %v1451_v8 = vpop.eup %1450  ;;  %v328_v15 = vadd.f32 1.0, %v1449_v3  ;;  %1470 = vlog2.f32 %v296_v5  ;;  %v485_v3 = vsub.f32 0.0, %v482_v47  ;;  %v486_v5 = vmul.f32 1.442695, %v483_v48  ;;  %s1347_s0 = smul.u32 24, %s2145_s16  ;;  %s2412_s7 = sld [smem:[#allocation3 + $0x2]] }
  0x51   : > { %v329_v17 = vadd.f32 1.0, %v1451_v8  ;;  %v1453_v21 = vpop.eup %1452  ;;  %1472 = vlog2.f32 %v327_v11  ;;  %v488_v11 = vmul.f32 1.442695, %v484_v53  ;;  %v519_v25 = vmul.f32 1.442695, %v516_v62  ;;  %s2416_s11 = sld [smem:[#allocation3]] }
  0x52   : > { %v1455_v27 = vpop.eup %1454  ;;  %1474 = vlog2.f32 %v328_v15  ;;  %v360_v35 = vadd.f32 1.0, %v1453_v21  ;;  %v549_v29 = vsub.f32 0.0, %v546_v6  ;;  %v550_v37 = vsub.f32 0.0, %v547_v12  ;;  %s642_s9 = sadd.s32 %s1347_s0, %s639_s8  ;;  %s2433_s24 = sld [smem:[#allocation3 + $0x1]] }
  0x53   : > { %v1457_v34 = vpop.eup %1456  ;;  %1476 = vlog2.f32 %v329_v17  ;;  %v361_v40 = vadd.f32 1.0, %v1455_v27  ;;  %v517_v17 = vsub.f32 0.0, %v514_v56  ;;  %v279_v56 = vmax.f32 %v1913_v0, 0.0  ;;  %s643_s10 = scalar_lea.vmem %s1905_s15, %s642_s9 [#allocation7]  ;;  %s2438_s12 = sld [smem:[#allocation3 + $0x3]] }
  0x54   : > { %v1459_v39 = vpop.eup %1458  ;;  %v362_v42 = vadd.f32 1.0, %v1457_v34  ;;  %1478 = vpow2.f32 %v422_v22  ;;  %v518_v22 = vsub.f32 0.0, %v515_v60  ;;  %v552_v45 = vmul.f32 1.442695, %v549_v29  ;;  %s1360_s26 = smul.u32 768, %s1753_s20  ;;  %s1227_s29 = sshll.u32 %s1927_s25, 4  ;;  %s2474_s29 = int_to_ptr.vmem [resolvable:$true] %s1227_s29 }
  0x55   : > { %1480 = vpow2.f32 %v424_v28  ;;  %v393_v52 = vadd.f32 1.0, %v1459_v39  ;;  %v1461_v58 = vpop.eup %1460  ;;  %v490_v28 = vmul.f32 1.442695, %v485_v3  ;;  %v554_v48 = vmul.f32 1.442695, %v550_v37  ;;  %v2036_v3 = vld [vmem:[%s1905_s15 + $0x198] sm:$0xff] }
  0x56   : > { %1482 = vlog2.f32 %v360_v35  ;;  %v1463_v63 = vpop.eup %1462  ;;  %v394_v15 = vadd.f32 1.0, %v1461_v58  ;;  %v548_v35 = vand.u32 2147483647, %v2022_v18  ;;  %v280_v60 = vmax.f32 %v1916_v1, 0.0  ;;  %s2472_s16 = scalar_lea.hbm %s2529_s4, %s1360_s26  ;;  %s1214_s0 = scalar_lea.sflag [#allocation5], %s1901_s30 }
  0x57   : > { %1484 = vlog2.f32 %v361_v40  ;;  %v1465_v8 = vpop.eup %1464  ;;  %v395_v34 = vadd.f32 1.0, %v1463_v63  ;;  %v521_v40 = vmul.f32 1.442695, %v517_v17  ;;  %v281_v62 = vmax.f32 %v1919_v2, 0.0  ;;  %v2048_v17 = vld [vmem:[%s1905_s15 + $0x1a8] sm:$0xff]  ;;  %s1147_s13 = ssub.f32 %s2412_s7, %s2416_s11  ;;  %s1677_s20 = scalar_lea.vmem %s2474_s29, 768 }
  0x58   : > { %1486 = vlog2.f32 %v362_v42  ;;  %v523_v42 = vmul.f32 1.442695, %v518_v22  ;;  %v551_v47 = vsub.f32 0.0, %v548_v35  ;;  %v426_v53 = vadd.f32 1.0, %v1465_v8  ;;  %p1678_p3 = scmp.ne.s32.totalorder %s2474_s29, %s1677_s20  ;;  %s1769_s8 = smov [#allocation8]  }
  0x59   : > { %1488 = vpow2.f32 %v453_v46  ;;  %v312_v63 = vmax.f32 %v1923_v4, 0.0  ;;  %v313_v6 = vmax.f32 %v1933_v9, 0.0  ;;  %v345_v1 = vmax.f32 %v1942_v20, 0.0  ;;  %s1681_s9 = sshll.u32 %s1769_s8, 4  ;;  %s1682_s9 = int_to_ptr.vmem [resolvable:$false] %s1681_s9 }
  0x5a   : > { %1490 = vlog2.f32 %v393_v52  ;;  %v556_v0 = vmul.f32 1.442695, %v551_v47  ;;  %v579_v9 = vand.u32 2147483647, %v2036_v3  ;;  %p1679_p7 = pnand %p1678_p3, %p1848_p8  ;;  %p1684_p12 = scmp.lt.s32.totalorder %s2474_s29, %s1682_s9 }
  0x5b   : > { %v1467_v14 = vpop.eup %1466  ;;  %1492 = vpow2.f32 %v455_v55 }
  0x5c   : > { %v1469_v21 = vpop.eup %1468  ;;  %1494 = vpow2.f32 %v457_v59  ;;  %p1680_p9 = pneg %p1679_p7 }
  0x5d   : > { %v2024_v27 = vpop.eup %1470  ;;  %1496 = vpow2.f32 %v486_v5 }
  0x5e   : > { %v1473_v30 = vpop.eup %1472  ;;  %1498 = vpow2.f32 %v488_v11  ;;  %v2041_v11 = vld [vmem:[%s1905_s15 + $0x1a0] sm:$0xff] }
  0x5f   : > { %v1475_v39 = vpop.eup %1474  ;;  %1500 = vlog2.f32 %v394_v15  ;;  %v346_v15 = vmax.f32 %v1945_v23, 0.0 }
  0x60   : > { %v2027_v41 = vpop.eup %1476  ;;  %1502 = vpow2.f32 %v519_v25  ;;  %v298_v25 = vmul.f32 0.6931472, %v1467_v14  ;;  %v333_v20 = vmul.f32 0.6931472, %v1475_v39  ;;  %v582_v14 = vsub.f32 0.0, %v579_v9 }
  0x61   : > { %v1479_v43 = vpop.eup %1478  ;;  %1504 = vpow2.f32 %v490_v28  ;;  %v300_v28 = vmul.f32 0.6931472, %v1469_v21  ;;  %v378_v9 = vmax.f32 %v1951_v26, 0.0 }
  0x62   : > { %v1481_v46 = vpop.eup %1480  ;;  %1506 = vlog2.f32 %v395_v34  ;;  %v427_v58 = vadd.f32 1.0, %v1479_v43  ;;  %v331_v34 = vmul.f32 0.6931472, %v1473_v30  ;;  %v581_v30 = vand.u32 2147483647, %v2048_v17 }
  0x63   : > { %v1483_v52 = vpop.eup %1482  ;;  %1508 = vpow2.f32 %v521_v40  ;;  %v428_v35 = vadd.f32 1.0, %v1481_v46  ;;  %v580_v40 = vand.u32 2147483647, %v2041_v11  ;;  %v585_v39 = vmul.f32 1.442695, %v582_v14 }
  0x64   : > { %v1485_v55 = vpop.eup %1484  ;;  %1510 = vpow2.f32 %v523_v42  ;;  %v337_v23 = vadd.f32 %v333_v20, %v313_v6 }
  0x65   : > { %v2030_v59 = vpop.eup %1486  ;;  %1512 = vpow2.f32 %v552_v45  ;;  %v583_v21 = vsub.f32 0.0, %v580_v40  ;;  %v379_v40 = vmax.f32 %v1957_v32, 0.0 }
  0x66   : > { %v1489_v5 = vpop.eup %1488  ;;  %1514 = vpow2.f32 %v554_v48 }
  0x67   : > { %v2043_v12 = vpop.eup %1490  ;;  %1516 = vlog2.f32 %v426_v53  ;;  %v459_v4 = vadd.f32 1.0, %v1489_v5  ;;  %v303_v53 = vadd.f32 %v298_v25, %v279_v56  ;;  %v304_v5 = vadd.f32 %v300_v28, %v280_v60 }
  0x68   : > { %v1493_v22 = vpop.eup %1492  ;;  %1518 = vlog2.f32 %v427_v58  ;;  %v584_v60 = vsub.f32 0.0, %v581_v30  ;;  %v335_v28 = vmul.f32 0.6931472, %v2027_v41 }
  0x69   : > { %v1495_v29 = vpop.eup %1494  ;;  %v460_v37 = vadd.f32 1.0, %v1493_v22  ;;  %1520 = vpow2.f32 %v556_v0  ;;  %v336_v22 = vadd.f32 %v331_v34, %v312_v63  ;;  %v587_v0 = vmul.f32 1.442695, %v583_v21 }
  0x6a   : > { %v1497_v42 = vpop.eup %1496  ;;  %v461_v43 = vadd.f32 1.0, %v1495_v29  ;;  %1522 = vlog2.f32 %v459_v4  ;;  %v364_v29 = vmul.f32 0.6931472, %v1483_v52  ;;  %v589_v21 = vmul.f32 1.442695, %v584_v60 }
  0x6b   : > { %v1499_v45 = vpop.eup %1498  ;;  %v492_v47 = vadd.f32 1.0, %v1497_v42  ;;  %1524 = vlog2.f32 %v460_v37  ;;  %v366_v42 = vmul.f32 0.6931472, %v1485_v55  ;;  %v302_v37 = vmul.f32 0.6931472, %v2024_v27 }
  0x6c   : > { %v1501_v48 = vpop.eup %1500  ;;  %v493_v58 = vadd.f32 1.0, %v1499_v45  ;;  %1526 = vlog2.f32 %v428_v35  ;;  %v339_v35 = vadd.f32 %v336_v22, %v303_v53  ;;  %v340_v55 = vadd.f32 %v337_v23, %v304_v5 }
  0x6d   : > { %v1503_v46 = vpop.eup %1502  ;;  %1528 = vlog2.f32 %v461_v43  ;;  %v369_v20 = vadd.f32 %v364_v29, %v345_v1  ;;  %v370_v43 = vadd.f32 %v366_v42, %v346_v15  ;;  %v397_v45 = vmul.f32 0.6931472, %v2043_v12 }
  0x6e   : > { %v1505_v8 = vpop.eup %1504  ;;  %1530 = vlog2.f32 %v492_v47  ;;  %v525_v56 = vadd.f32 1.0, %v1503_v46  ;;  %v399_v47 = vmul.f32 0.6931472, %v1501_v48  ;;  %v2539_v53 = vmax.f32 %v1936_v10, 0.0 }
  0x6f   : > { %v1507_v4 = vpop.eup %1506  ;;  %1532 = vlog2.f32 %v493_v58  ;;  %v494_v6 = vadd.f32 1.0, %v1505_v8  ;;  %v305_v8 = vadd.f32 %v302_v37, %v281_v62  ;;  %v368_v1 = vmul.f32 0.6931472, %v2030_v59 }
  0x70   : > { %v1509_v25 = vpop.eup %1508  ;;  %1534 = vpow2.f32 %v585_v39  ;;  %v338_v23 = vadd.f32 %v335_v28, %v2539_v53  ;;  %v411_v15 = vmax.f32 %v1964_v38, 0.0  ;;  %v412_v12 = vmax.f32 %v1970_v49, 0.0 }
  0x71   : > { %v1511_v63 = vpop.eup %1510  ;;  %v526_v52 = vadd.f32 1.0, %v1509_v25  ;;  %1536 = vpow2.f32 %v587_v0  ;;  %v372_v30 = vadd.f32 %v369_v20, %v339_v35  ;;  %v402_v46 = vadd.f32 %v397_v45, %v378_v9 }
  0x72   : > { %v1513_v34 = vpop.eup %1512  ;;  %1538 = vlog2.f32 %v525_v56  ;;  %v527_v58 = vadd.f32 1.0, %v1511_v63  ;;  %v373_v2 = vadd.f32 %v370_v43, %v340_v55  ;;  %v403_v62 = vadd.f32 %v399_v47, %v379_v40 }
  0x73   : > { %v1515_v26 = vpop.eup %1514  ;;  %v558_v27 = vadd.f32 1.0, %v1513_v34  ;;  %1540 = vlog2.f32 %v526_v52  ;;  %v341_v29 = vadd.f32 %v338_v23, %v305_v8  ;;  %v2540_v59 = vmax.f32 %v1948_v24, 0.0 }
  0x74   : > { %v1517_v32 = vpop.eup %1516  ;;  %v559_v14 = vadd.f32 1.0, %v1515_v26  ;;  %1542 = vlog2.f32 %v494_v6  ;;  %v380_v38 = vmax.f32 %v1960_v33, 0.0  ;;  %v401_v49 = vmul.f32 0.6931472, %v1507_v4 }
  0x75   : > { %v1519_v41 = vpop.eup %1518  ;;  %1544 = vlog2.f32 %v558_v27  ;;  %v430_v5 = vmul.f32 0.6931472, %v1517_v32  ;;  %v371_v0 = vadd.f32 %v368_v1, %v2540_v59  ;;  %v405_v9 = vadd.f32 %v402_v46, %v372_v30  ;;  %v2077_v46 = vld [vmem:[%s1905_s15] sm:$0xff] }
  0x76   : > { %v1521_v48 = vpop.eup %1520  ;;  %1546 = vlog2.f32 %v559_v14  ;;  %v432_v39 = vmul.f32 0.6931472, %v1519_v41  ;;  %v444_v60 = vmax.f32 %v1978_v61, 0.0  ;;  %v406_v28 = vadd.f32 %v403_v62, %v373_v2 }
  0x77   : > { %v1523_v22 = vpop.eup %1522  ;;  %1548 = vpow2.f32 %v589_v21  ;;  %v560_v56 = vadd.f32 1.0, %v1521_v48  ;;  %v435_v37 = vadd.f32 %v430_v5, %v411_v15  ;;  %v445_v52 = vmax.f32 %v1981_v7, 0.0  ;;  %v2080_v5 = vld [vmem:[%s1905_s15 + $0x18] sm:$0xff] }
  0x78   : > { %v1525_v10 = vpop.eup %1524  ;;  %1550 = vlog2.f32 %v527_v58  ;;  %v463_v63 = vmul.f32 0.6931472, %v1523_v22  ;;  %v436_v6 = vadd.f32 %v432_v39, %v412_v12  ;;  %v374_v35 = vadd.f32 %v371_v0, %v341_v29 }
  0x79   : > { %v1527_v42 = vpop.eup %1526  ;;  %v465_v34 = vmul.f32 0.6931472, %v1525_v10  ;;  %v404_v55 = vadd.f32 %v401_v49, %v380_v38  ;;  %v413_v33 = vmax.f32 %v1973_v50, 0.0  ;;  %v477_v26 = vmax.f32 %v1988_v16, 0.0 }
  0x7a   : > { %v1529_v25 = vpop.eup %1528  ;;  %v434_v4 = vmul.f32 0.6931472, %v1527_v42  ;;  %v478_v43 = vmax.f32 %v1992_v19, 0.0  ;;  %1552 = vlog2.f32 %v560_v56  ;;  %v438_v45 = vadd.f32 %v435_v37, %v405_v9  ;;  %v2086_v56 = vld [vmem:[%s1905_s15 + $0x8] sm:$0xff] }
  0x7b   : > { %v1531_v40 = vpop.eup %1530  ;;  %v468_v27 = vadd.f32 %v463_v63, %v444_v60  ;;  %v439_v7 = vadd.f32 %v436_v6, %v406_v28  ;;  %v469_v21 = vadd.f32 %v465_v34, %v445_v52  ;;  %v407_v53 = vadd.f32 %v404_v55, %v374_v35  ;;  %v2095_v6 = vld [vmem:[%s1905_s15 + $0x10] sm:$0xff]  ;;  %v2098_v52 = vld [vmem:[%s1905_s15 + $0x28] sm:$0xff] }
  0x7c   : > { %v1533_v24 = vpop.eup %1532  ;;  %v496_v32 = vmul.f32 0.6931472, %v1531_v40  ;;  %v437_v23 = vadd.f32 %v434_v4, %v413_v33  ;;  %v446_v19 = vmax.f32 %v1984_v13, 0.0  ;;  %v467_v1 = vmul.f32 0.6931472, %v1529_v25  ;;  %v2089_v25 = vld [vmem:[%s1905_s15 + $0x20] sm:$0xff] }
  0x7d   : > { %v1535_v20 = vpop.eup %1534  ;;  %v498_v41 = vmul.f32 0.6931472, %v1533_v24  ;;  %v471_v12 = vadd.f32 %v468_v27, %v438_v45  ;;  %v510_v48 = vmax.f32 %v1997_v31, 0.0  ;;  %v472_v2 = vadd.f32 %v469_v21, %v439_v7 }
  0x7e   : > { %v1537_v61 = vpop.eup %1536  ;;  %v591_v47 = vadd.f32 1.0, %v1535_v20  ;;  %v501_v58 = vadd.f32 %v496_v32, %v477_v26  ;;  %v511_v39 = vmax.f32 %v2004_v44, 0.0  ;;  %v440_v29 = vadd.f32 %v437_v23, %v407_v53 }
  0x7f   : > { %v1539_v14 = vpop.eup %1538  ;;  %v592_v8 = vadd.f32 1.0, %v1537_v61  ;;  %v502_v62 = vadd.f32 %v498_v41, %v478_v43  ;;  %v479_v59 = vmax.f32 %v2000_v36, 0.0  ;;  %v543_v0 = vmax.f32 %v2012_v54, 0.0 }
  0x80   : > { %v1541_v50 = vpop.eup %1540  ;;  %1554 = vlog2.f32 %v591_v47  ;;  %v529_v30 = vmul.f32 0.6931472, %v1539_v14  ;;  %v610_v31 = vlaneseq  ;;  %v470_v38 = vadd.f32 %v467_v1, %v446_v19 }
  0x81   : > { %v1543_v16 = vpop.eup %1542  ;;  %1556 = vlog2.f32 %v592_v8  ;;  %v531_v13 = vmul.f32 0.6931472, %v1541_v50  ;;  %v665_v44 = vmax.f32 %v2077_v46, %v2080_v5  ;;  %v504_v37 = vadd.f32 %v501_v58, %v471_v12  ;;  %v2118_v8 = vld [vmem:[%s2527_s2] sm:$0x7]  ;;  %v2124_v58 = vld [vmem:[%s1905_s15 + $0x48] sm:$0xff] }
  0x82   : > { %v1545_v15 = vpop.eup %1544  ;;  %v500_v49 = vmul.f32 0.6931472, %v1543_v16  ;;  %v534_v60 = vadd.f32 %v529_v30, %v510_v48  ;;  %v544_v36 = vmax.f32 %v2016_v57, 0.0  ;;  %v505_v54 = vadd.f32 %v502_v62, %v472_v2  ;;  %v2121_v12 = vld [vmem:[%s1905_s15 + $0x30] sm:$0xff] }
  0x83   : > { %v1547_v22 = vpop.eup %1546  ;;  %v562_v63 = vmul.f32 0.6931472, %v1545_v15  ;;  %v535_v40 = vadd.f32 %v531_v13, %v511_v39  ;;  %v512_v34 = vmax.f32 %v2009_v51, 0.0  ;;  %v672_v24 = vmax.f32 %v2086_v56, %v2089_v25 }
  0x84   : > { %v1549_v10 = vpop.eup %1548  ;;  %v564_v28 = vmul.f32 0.6931472, %v1547_v22  ;;  %v473_v35 = vadd.f32 %v470_v38, %v440_v29  ;;  %v503_v55 = vadd.f32 %v500_v49, %v479_v59  ;;  %v666_v57 = vrot.slane %v665_v44, 4  ;;  %v2134_v29 = vld [vmem:[%s1905_s15 + $0x38] sm:$0xff]  ;;  %v2137_v59 = vld [vmem:[%s1905_s15 + $0x50] sm:$0xff] }
  0x85   : > { %v593_v42 = vadd.f32 1.0, %v1549_v10  ;;  %v1551_v9 = vpop.eup %1550  ;;  %v537_v20 = vadd.f32 %v534_v60, %v504_v37  ;;  %v567_v26 = vadd.f32 %v562_v63, %v543_v0  ;;  %v2106_v43 = vshrl.u32 %v610_v31, 7  ;;  %v2148_v37 = vld [vmem:[%s1905_s15 + $0x60] sm:$0xff]  ;;  %v2151_v60 = vld [vmem:[%s1905_s15 + $0x78] sm:$0xff] }
  0x86   : > { %v533_v33 = vmul.f32 0.6931472, %v1551_v9  ;;  %v679_v61 = vmax.f32 %v2095_v6, %v2098_v52  ;;  %v538_v45 = vadd.f32 %v535_v40, %v505_v54  ;;  %v545_v51 = vmax.f32 %v2022_v18, 0.0  ;;  %v2157_v40 = vld [vmem:[%s1905_s15 + $0x68] sm:$0xff] }
  0x87   : > { %1558 = vlog2.f32 %v593_v42  ;;  %v1553_v4 = vpop.eup %1552  ;;  %v568_v27 = vadd.f32 %v564_v28, %v544_v36  ;;  %v576_v32 = vmax.f32 %v2036_v3, 0.0  ;;  %v577_v47 = vmax.f32 %v2041_v11, 0.0  ;;  %v2160_v28 = vld [vmem:[%s1905_s15 + $0x80] sm:$0xff] }
  0x88   : > { %v612_v14 = vsub.s32 0, %v2106_v43  ;;  %v616_v7 = vsub.s32 1, %v2106_v43  ;;  %v673_v21 = vrot.slane %v672_v24, 4  ;;  %v506_v18 = vadd.f32 %v503_v55, %v473_v35 }
  0x89   : > { %v536_v50 = vadd.f32 %v533_v33, %v512_v34  ;;  %v566_v53 = vmul.f32 0.6931472, %v1553_v4  ;;  %v667_v3 = vmax.f32 %v665_v44, %v666_v57  ;;  %v570_v11 = vadd.f32 %v567_v26, %v537_v20 }
  0x8a   : > { %v680_v19 = vrot.slane %v679_v61, 4  ;;  %v571_v1 = vadd.f32 %v568_v27, %v538_v45  ;;  %v2127_v30 = vrot.slane %v2118_v8, %v612_v14  ;;  %v2130_v22 = vrot.slane %v2118_v8, %v616_v7 }
  0x8b   : > { %v674_v2 = vmax.f32 %v672_v24, %v673_v21  ;;  %v539_v62 = vadd.f32 %v536_v50, %v506_v18  ;;  %v569_v39 = vadd.f32 %v566_v53, %v545_v51  ;;  %v668_v10 = vrot.slane %v667_v3, 2  ;;  %v2178_v51 = vld [vmem:[%s1905_s15 + $0x58] sm:$0xff] }
  0x8c   : > { %v681_v38 = vmax.f32 %v679_v61, %v680_v19  ;;  %v773_v49 = vmax.f32 %v2121_v12, %v2124_v58  ;;  %v578_v42 = vmax.f32 %v2048_v17, 0.0  ;;  %v620_v9 = vsub.s32 2, %v2106_v43  ;;  %v2172_v61 = vld [vmem:[%s1905_s15 + $0x40] sm:$0xff] }
  0x8d   : > { %v1555_v41 = vpop.eup %1554  ;;  %v675_v54 = vrot.slane %v674_v2, 2  ;;  %v780_v17 = vmax.f32 %v2134_v29, %v2137_v59  ;;  %v572_v34 = vadd.f32 %v569_v39, %v539_v62  ;;  %v669_v55 = vmax.f32 %v667_v3, %v668_v10  ;;  %v644_v10 = vld [vmem:[%s643_s10] ss:$8 sm:$0x7]  ;;  %s1683_s10 = scalar_lea.vmem %s1682_s9, 1536 }
  0x8e   : > { %v1557_v23 = vpop.eup %1556  ;;  %v595_v16 = vmul.f32 0.6931472, %v1555_v41  ;;  %v682_v33 = vrot.slane %v681_v38, 2  ;;  %v774_v57 = vrot.slane %v773_v49, 4  ;;  %v881_v4 = vmax.f32 %v2148_v37, %v2151_v60  ;;  %p1685_p13 = scmp.lt.s32.totalorder %s1683_s10, %s1677_s20 }
  0x8f   : > { %v597_v15 = vmul.f32 0.6931472, %v1557_v23  ;;  %v2167_v26 = vrot.slane %v2118_v8, %v620_v9  ;;  %v888_v45 = vmax.f32 %v2157_v40, %v2160_v28  ;;  %v781_v27 = vrot.slane %v780_v17, 4 }
  0x90   : > { %v600_v48 = vadd.f32 %v595_v16, %v576_v32  ;;  %v2181_v32 = vld [vmem:[%s1905_s15 + $0x70] sm:$0xff]  ;;  %v670_v7 = vrot.slane %v669_v55, 1  ;;  %v676_v21 = vmax.f32 %v674_v2, %v675_v54  ;;  %v683_v41 = vmax.f32 %v681_v38, %v682_v33  ;;  %p1686_p2 = por %p1685_p13, %p1684_p12 }
  0x91   : > { %v601_v13 = vadd.f32 %v597_v15, %v577_v47  ;;  %v2184_v47 = vld [vmem:[%s1905_s15 + $0x88] sm:$0xff]  ;;  %v775_v18 = vmax.f32 %v773_v49, %v774_v57  ;;  %v882_v50 = vrot.slane %v881_v4, 4  ;;  %v787_v3 = vmax.f32 %v2172_v61, %v2178_v51 }
  0x92   : > { %v603_v0 = vadd.f32 %v600_v48, %v570_v11  ;;  %v889_v23 = vrot.slane %v888_v45, 4  ;;  %v895_v11 = vmax.f32 %v2181_v32, %v2184_v47  ;;  %v782_v16 = vmax.f32 %v780_v17, %v781_v27  ;;  %p1687_p5 = pnand %p1686_p2, %p1680_p9 }
  0x93   : > { %v604_v44 = vadd.f32 %v601_v13, %v571_v1  ;;  %v671_v19 = vmax.f32 %v669_v55, %v670_v7  ;;  %v677_v1 = vrot.slane %v676_v21, 1  ;;  %v684_v15 = vrot.slane %v683_v41, 1 }
  0x94   : > { %v1559_v36 = vpop.eup %1558  ;;  %v625_v63 = vmul.f32 %v2127_v30, %v603_v0  ;;  %v776_v48 = vrot.slane %v775_v18, 2  ;;  %v883_v2 = vmax.f32 %v881_v4, %v882_v50  ;;  %v788_v62 = vrot.slane %v787_v3, 4 }
  0x95   : > { %v599_v24 = vmul.f32 0.6931472, %v1559_v36  ;;  %v626_v35 = vmul.f32 %v2130_v22, %v604_v44  ;;  %v890_v39 = vmax.f32 %v888_v45, %v889_v23  ;;  %v896_v13 = vrot.slane %v895_v11, 4 }
  0x96   : > { %631 = vst [vmem:[%s1927_s25] sm:$0xff] %v625_v63  ;;  %v783_v0 = vrot.slane %v782_v16, 2  ;;  %v678_v38 = vmax.f32 %v676_v21, %v677_v1  ;;  %v686_v49 = vsub.f32 %v2077_v46, %v671_v19  ;;  %v689_v44 = vsub.f32 %v2080_v5, %v671_v19 }
  0x97   : > { %v602_v20 = vadd.f32 %v599_v24, %v578_v42  ;;  %632 = vst [vmem:[%s1927_s25 + $0x8] sm:$0xff] %v626_v35  ;;  %v685_v42 = vmax.f32 %v683_v41, %v684_v15  ;;  %v777_v9 = vmax.f32 %v775_v18, %v776_v48  ;;  %v884_v36 = vrot.slane %v883_v2, 2 }
  0x98   : > { %v646_v63 = vmul.f32 %v644_v10, %v2118_v8  ;;  %v789_v54 = vmax.f32 %v787_v3, %v788_v62  ;;  %v891_v17 = vrot.slane %v890_v39, 2  ;;  %v784_v24 = vmax.f32 %v782_v16, %v783_v0 }
  0x99   : > { %v605_v14 = vadd.f32 %v602_v20, %v572_v34  ;;  %v897_v34 = vmax.f32 %v895_v11, %v896_v13  ;;  %vm2198_vm0 = vcmp.lt.s32.totalorder %v610_v31, 384  ;;  %v687_v55 = vsub.f32 %v2086_v56, %v678_v38 }
  0x9a   : > { %v692_v46 = vmul.f32 1.442695, %v686_v49  ;;  %v688_v5 = vsub.f32 %v2095_v6, %v685_v42  ;;  %v698_v57 = vmul.f32 1.442695, %v689_v44  ;;  %v778_v4 = vrot.slane %v777_v9, 1 }
  0x9b   : > { %v627_v53 = vmul.f32 %v2167_v26, %v605_v14  ;;  %v885_v20 = vmax.f32 %v883_v2, %v884_v36  ;;  %v790_v45 = vrot.slane %v789_v54, 2  ;;  %v892_v27 = vmax.f32 %v890_v39, %v891_v17 }
  0x9c   : > { %v898_v14 = vrot.slane %v897_v34, 2  ;;  %v690_v7 = vsub.f32 %v2089_v25, %v678_v38  ;;  %v785_v21 = vrot.slane %v784_v24, 1  ;;  %v691_v31 = vsub.f32 %v2098_v52, %v685_v42 }
  0x9d   : > { %633 = vst [vmem:[%s1927_s25 + $0x10] sm:$0xff] %v627_v53  ;;  %1560 = vpow2.f32 %v692_v46  ;;  %v694_v56 = vmul.f32 1.442695, %v687_v55  ;;  %v779_v41 = vmax.f32 %v777_v9, %v778_v4  ;;  %v886_v6 = vrot.slane %v885_v20, 1  ;;  %v2233_v55 = vld [vmem:[%s1905_s15 + $0xa8] sm:$0xff] }
  0x9e   : > { %1562 = vpow2.f32 %v698_v57  ;;  %v696_v18 = vmul.f32 1.442695, %v688_v5  ;;  %v791_v50 = vmax.f32 %v789_v54, %v790_v45  ;;  %v893_v53 = vrot.slane %v892_v27, 1  ;;  %v2242_v57 = vld [vmem:[%s1905_s15 + $0xa0] sm:$0xff] }
  0x9f   : > { %v899_v3 = vmax.f32 %v897_v34, %v898_v14  ;;  %v700_v23 = vmul.f32 1.442695, %v690_v7  ;;  %v786_v11 = vmax.f32 %v784_v24, %v785_v21  ;;  %v702_v16 = vmul.f32 1.442695, %v691_v31 }
  0xa0   : > { %1564 = vpow2.f32 %v694_v56  ;;  %v794_v25 = vsub.f32 %v2121_v12, %v779_v41  ;;  %v887_v1 = vmax.f32 %v885_v20, %v886_v6  ;;  %v792_v15 = vrot.slane %v791_v50, 1 }
  0xa1   : > { %v900_v19 = vrot.slane %v899_v3, 1  ;;  %1566 = vpow2.f32 %v696_v18  ;;  %v797_v52 = vsub.f32 %v2124_v58, %v779_v41  ;;  %v894_v48 = vmax.f32 %v892_v27, %v893_v53 }
  0xa2   : > { %1568 = vpow2.f32 %v700_v23  ;;  %v795_v2 = vsub.f32 %v2134_v29, %v786_v11  ;;  %v798_v39 = vsub.f32 %v2137_v59, %v786_v11  ;;  %v800_v13 = vmul.f32 1.442695, %v794_v25 }
  0xa3   : > { %v901_v62 = vmax.f32 %v899_v3, %v900_v19  ;;  %1570 = vpow2.f32 %v702_v16  ;;  %v902_v10 = vsub.f32 %v2148_v37, %v887_v1  ;;  %v793_v0 = vmax.f32 %v791_v50, %v792_v15 }
  0xa4   : > { %v645_v33 = vld [vmem:[%s1927_s25] ss:$8 sm:$0x7]  ;;  %v806_v38 = vmul.f32 1.442695, %v797_v52  ;;  %v903_v12 = vsub.f32 %v2157_v40, %v894_v48  ;;  %v656_v9 = vadd.s32 8, %v2106_v43  ;;  %1572 = vpow2.f32 %v800_v13 }
  0xa5   : > { %v647_v8 = vsub.f32 %v645_v33, %v646_v63  ;;  %v802_v49 = vmul.f32 1.442695, %v795_v2  ;;  %v904_v42 = vsub.f32 %v2181_v32, %v901_v62  ;;  %v808_v44 = vmul.f32 1.442695, %v798_v39 }
  0xa6   : > { %v908_v29 = vmul.f32 1.442695, %v902_v10  ;;  %v796_v59 = vsub.f32 %v2172_v61, %v793_v0  ;;  %1574 = vpow2.f32 %v806_v38  ;;  %v905_v37 = vsub.f32 %v2151_v60, %v887_v1  ;;  %v2227_v61 = vld [vmem:[%s1905_s15 + $0x90] sm:$0xff]  ;;  %v2230_v60 = vld [vmem:[%s1905_s15 + $0x98] sm:$0xff] }
  0xa7   : > { %652 = vst.msk [vmem:[%s1927_s25] ss:$8 sm:$0x7] %vm2198_vm0, %v647_v8  ;;  %v910_v40 = vmul.f32 1.442695, %v903_v12  ;;  %1576 = vpow2.f32 %v802_v49  ;;  %v906_v32 = vsub.f32 %v2160_v28, %v894_v48  ;;  %v907_v63 = vsub.f32 %v2184_v47, %v901_v62  ;;  %v2236_v28 = vld [vmem:[%s1905_s15 + $0xb0] sm:$0xff] }
  0xa8   : > { %v912_v54 = vmul.f32 1.442695, %v904_v42  ;;  %v2223_v17 = vcvt.s32.f32 %v2106_v43  ;;  %v799_v34 = vsub.f32 %v2178_v51, %v793_v0  ;;  %1578 = vpow2.f32 %v808_v44  ;;  %v2245_v51 = vld [vmem:[%s1905_s15 + $0xb8] sm:$0xff]  ;;  %s1148_s15 = ssub.f32 %s2438_s12, %s2433_s24 }
  0xa9   : > { %1580 = vpow2.f32 %v908_v29  ;;  %v2238_v46 = vcvt.s32.f32 %v656_v9  ;;  %v914_v5 = vmul.f32 1.442695, %v905_v37  ;;  %v804_v20 = vmul.f32 1.442695, %v796_v59 }
  0xaa   : > { %v1561_v58 = vpop.eup %1560  ;;  %1582 = vpow2.f32 %v910_v40  ;;  %v916_v8 = vmul.f32 1.442695, %v906_v32  ;;  %v918_v45 = vmul.f32 1.442695, %v907_v63  ;;  %v810_v14 = vmul.f32 1.442695, %v799_v34  ;;  %s1149_s22 = smul.f32 %s1148_s15, %s1147_s13 }
  0xab   : > { %v1563_v36 = vpop.eup %1562  ;;  %v725_v33 = vmul.f32 %v1561_v58, %v2223_v17  ;;  %1584 = vpow2.f32 %v912_v54  ;;  %v989_v7 = vmax.f32 %v2227_v61, %v2233_v55  ;;  %v996_v21 = vmax.f32 %v2230_v60, %v2236_v28 }
  0xac   : > { %v704_v24 = vadd.f32 %v1563_v36, %v1561_v58  ;;  %1586 = vpow2.f32 %v914_v5  ;;  %v728_v41 = vmul.f32 %v1563_v36, %v2238_v46  ;;  %v1003_v6 = vmax.f32 %v2242_v57, %v2245_v51 }
  0xad   : > { %v1565_v47 = vpop.eup %1564  ;;  %1588 = vpow2.f32 %v916_v8  ;;  %v990_v50 = vrot.slane %v989_v7, 4  ;;  %v997_v53 = vrot.slane %v996_v21, 4 }
  0xae   : > { %v1567_v4 = vpop.eup %1566  ;;  %v705_v56 = vrot.slane %v704_v24, 4  ;;  %v726_v18 = vmul.f32 %v1565_v47, %v2223_v17  ;;  %1590 = vpow2.f32 %v918_v45  ;;  %v1004_v11 = vrot.slane %v1003_v6, 4 }
  0xaf   : > { %v1569_v27 = vpop.eup %1568  ;;  %1592 = vpow2.f32 %v804_v20  ;;  %v991_v19 = vmax.f32 %v989_v7, %v990_v50  ;;  %v998_v25 = vmax.f32 %v996_v21, %v997_v53  ;;  %v731_v15 = vadd.f32 %v728_v41, %v725_v33 }
  0xb0   : > { %v1571_v31 = vpop.eup %1570  ;;  %v711_v3 = vadd.f32 %v1569_v27, %v1565_v47  ;;  %v729_v23 = vmul.f32 %v1569_v27, %v2238_v46  ;;  %1594 = vpow2.f32 %v810_v14  ;;  %v706_v1 = vadd.f32 %v705_v56, %v704_v24 }
  0xb1   : > { %v718_v16 = vadd.f32 %v1571_v31, %v1567_v4  ;;  %v1005_v52 = vmax.f32 %v1003_v6, %v1004_v11  ;;  %v2256_v48 = vpop.eup %1572  ;;  %v727_v2 = vmul.f32 %v1567_v4, %v2223_v17  ;;  %v730_v62 = vmul.f32 %v1571_v31, %v2238_v46 }
  0xb2   : > { %v992_v39 = vrot.slane %v991_v19, 2  ;;  %v999_v13 = vrot.slane %v998_v25, 2  ;;  %v712_v0 = vrot.slane %v711_v3, 4  ;;  %v738_v38 = vadd.f32 %v729_v23, %v726_v18 }
  0xb3   : > { %v1575_v10 = vpop.eup %1574  ;;  %v1006_v12 = vrot.slane %v1005_v52, 2  ;;  %v719_v42 = vrot.slane %v718_v16, 4  ;;  %v707_v58 = vrot.slane %v706_v1, 2  ;;  %v732_v9 = vrot.slane %v731_v15, 4 }
  0xb4   : > { %v2260_v49 = vpop.eup %1576  ;;  %v993_v29 = vmax.f32 %v991_v19, %v992_v39  ;;  %v745_v59 = vadd.f32 %v730_v62, %v727_v2  ;;  %v1000_v37 = vmax.f32 %v998_v25, %v999_v13  ;;  %v713_v32 = vadd.f32 %v712_v0, %v711_v3 }
  0xb5   : > { %v2262_v44 = vpop.eup %1578  ;;  %v739_v63 = vrot.slane %v738_v38, 4  ;;  %v1007_v54 = vmax.f32 %v1005_v52, %v1006_v12  ;;  %v720_v24 = vadd.f32 %v719_v42, %v718_v16  ;;  %v708_v33 = vadd.f32 %v707_v58, %v706_v1 }
  0xb6   : > { %v2264_v36 = vpop.eup %1580  ;;  %v733_v5 = vadd.f32 %v732_v9, %v731_v15  ;;  %v994_v4 = vrot.slane %v993_v29, 1  ;;  %v746_v8 = vrot.slane %v745_v59, 4  ;;  %v1001_v27 = vrot.slane %v1000_v37, 1 }
  0xb7   : > { %v2266_v40 = vpop.eup %1582  ;;  %v714_v7 = vrot.slane %v713_v32, 2  ;;  %v2278_v21 = vadd.f32 %v739_v63, %v738_v38  ;;  %v1008_v56 = vrot.slane %v1007_v54, 1  ;;  %v721_v6 = vrot.slane %v720_v24, 2 }
  0xb8   : > { %v2268_v34 = vpop.eup %1584  ;;  %v812_v18 = vadd.f32 %v1575_v10, %v2256_v48  ;;  %v709_v23 = vrot.slane %v708_v33, 1  ;;  %v734_v11 = vrot.slane %v733_v5, 2  ;;  %v995_v19 = vmax.f32 %v993_v29, %v994_v4 }
  0xb9   : > { %v2270_v47 = vpop.eup %1586  ;;  %v819_v25 = vadd.f32 %v2262_v44, %v2260_v49  ;;  %v1002_v52 = vmax.f32 %v1000_v37, %v1001_v27  ;;  %v2287_v2 = vadd.f32 %v746_v8, %v745_v59  ;;  %v1009_v39 = vmax.f32 %v1007_v54, %v1008_v56 }
  0xba   : > { %v2272_v20 = vpop.eup %1588  ;;  %v920_v45 = vadd.f32 %v2270_v47, %v2264_v36  ;;  %v2289_v13 = vadd.f32 %v714_v7, %v713_v32  ;;  %v741_v0 = vrot.slane %v2278_v21, 2  ;;  %v813_v38 = vrot.slane %v812_v18, 4 }
  0xbb   : > { %v2276_v14 = vpop.eup %1590  ;;  %v927_v31 = vadd.f32 %v2272_v20, %v2266_v40  ;;  %v2292_v42 = vadd.f32 %v709_v23, %v708_v33  ;;  %v2294_v58 = vadd.f32 %v721_v6, %v720_v24  ;;  %v1010_v29 = vsub.f32 %v2227_v61, %v995_v19 }
  0xbc   : > { %v1593_v41 = vpop.eup %1592  ;;  %v921_v50 = vrot.slane %v920_v45, 4  ;;  %v934_v53 = vadd.f32 %v2276_v14, %v2268_v34  ;;  %v2297_v63 = vadd.f32 %v734_v11, %v733_v5  ;;  %v820_v37 = vrot.slane %v819_v25, 4 }
  0xbd   : > { %v1595_v3 = vpop.eup %1594  ;;  %v928_v16 = vrot.slane %v927_v31, 4  ;;  %v1011_v4 = vsub.f32 %v2230_v60, %v1002_v52  ;;  %v833_v32 = vmul.f32 %v2256_v48, %v2223_v17  ;;  %v836_v54 = vmul.f32 %v1575_v10, %v2238_v46 }
  0xbe   : > { %v922_v1 = vadd.f32 %v921_v50, %v920_v45  ;;  %v935_v15 = vrot.slane %v934_v53, 4  ;;  %v826_v12 = vadd.f32 %v1595_v3, %v1593_v41  ;;  %v1012_v33 = vsub.f32 %v2242_v57, %v1009_v39 }
  0xbf   : > { %v929_v62 = vadd.f32 %v928_v16, %v927_v31  ;;  %v716_v24 = vrot.slane %v2289_v13, 1  ;;  %v814_v45 = vadd.f32 %v813_v38, %v812_v18  ;;  %v1013_v61 = vsub.f32 %v2233_v55, %v995_v19 }
  0xc0   : > { %v936_v9 = vadd.f32 %v935_v15, %v934_v53  ;;  %v923_v59 = vrot.slane %v922_v1, 2  ;;  %v827_v27 = vrot.slane %v826_v12, 4  ;;  %1596 = vrcp.f32 %v2292_v42 }
  0xc1   : > { %v930_v8 = vrot.slane %v929_v62, 2  ;;  %v1014_v7 = vsub.f32 %v2236_v28, %v1002_v52  ;;  %v1016_v60 = vmul.f32 1.442695, %v1010_v29  ;;  %v821_v31 = vadd.f32 %v820_v37, %v819_v25 }
  0xc2   : > { %v937_v5 = vrot.slane %v936_v9, 2  ;;  %v924_v56 = vadd.f32 %v923_v59, %v922_v1  ;;  %v1015_v48 = vsub.f32 %v2245_v51, %v1009_v39  ;;  %v1018_v10 = vmul.f32 1.442695, %v1011_v4 }
  0xc3   : > { %v834_v57 = vmul.f32 %v2260_v49, %v2223_v17  ;;  %v839_v6 = vadd.f32 %v836_v54, %v833_v32  ;;  %v931_v50 = vadd.f32 %v930_v8, %v929_v62  ;;  %v1020_v18 = vmul.f32 1.442695, %v1012_v33 }
  0xc4   : > { %v815_v53 = vrot.slane %v814_v45, 2  ;;  %v828_v23 = vadd.f32 %v827_v27, %v826_v12  ;;  %v837_v55 = vmul.f32 %v2262_v44, %v2238_v46  ;;  %v1022_v11 = vmul.f32 1.442695, %v1013_v61 }
  0xc5   : > { %v835_v28 = vmul.f32 %v1593_v41, %v2223_v17  ;;  %v938_v16 = vadd.f32 %v937_v5, %v936_v9  ;;  %1598 = vpow2.f32 %v1016_v60  ;;  %v1024_v19 = vmul.f32 1.442695, %v1014_v7 }
  0xc6   : > { %v822_v25 = vrot.slane %v821_v31, 2  ;;  %v925_v51 = vrot.slane %v924_v56, 1  ;;  %1600 = vpow2.f32 %v1018_v10  ;;  %v1026_v1 = vmul.f32 1.442695, %v1015_v48 }
  0xc7   : > { %v838_v49 = vmul.f32 %v1595_v3, %v2238_v46  ;;  %v840_v15 = vrot.slane %v839_v6, 4  ;;  %v932_v52 = vrot.slane %v931_v50, 1  ;;  %1602 = vpow2.f32 %v1020_v18 }
  0xc8   : > { %v816_v62 = vadd.f32 %v815_v53, %v814_v45  ;;  %v829_v39 = vrot.slane %v828_v23, 2  ;;  %v846_v38 = vadd.f32 %v837_v55, %v834_v57  ;;  %1604 = vpow2.f32 %v1022_v11 }
  0xc9   : > { %v939_v44 = vrot.slane %v938_v16, 1  ;;  %v941_v41 = vmul.f32 %v2264_v36, %v2223_v17  ;;  %v944_v12 = vmul.f32 %v2270_v47, %v2238_v46  ;;  %1606 = vpow2.f32 %v1024_v19 }
  0xca   : > { %v823_v9 = vadd.f32 %v822_v25, %v821_v31  ;;  %v2319_v29 = vadd.f32 %v925_v51, %v924_v56  ;;  %v942_v3 = vmul.f32 %v2266_v40, %v2223_v17  ;;  %1608 = vpow2.f32 %v1026_v1 }
  0xcb   : > { %v2323_v37 = vadd.f32 %v932_v52, %v931_v50  ;;  %v943_v59 = vmul.f32 %v2268_v34, %v2223_v17  ;;  %v945_v4 = vmul.f32 %v2272_v20, %v2238_v46  ;;  %v946_v36 = vmul.f32 %v2276_v14, %v2238_v46 }
  0xcc   : > { %v2332_v47 = vadd.f32 %v716_v24, %v2289_v13  ;;  %v723_v32 = vrot.slane %v2294_v58, 1  ;;  %v2338_v40 = vadd.f32 %v741_v0, %v2278_v21  ;;  %v748_v54 = vrot.slane %v2287_v2, 2 }
  0xcd   : > { %v841_v8 = vadd.f32 %v840_v15, %v839_v6  ;;  %v853_v34 = vadd.f32 %v838_v49, %v835_v28  ;;  %v2341_v33 = vadd.f32 %v939_v44, %v938_v16  ;;  %v947_v20 = vadd.f32 %v944_v12, %v941_v41  ;;  %v2343_v45 = vpop.eup %1596 }
  0xce   : > { %v817_v14 = vrot.slane %v816_v62, 1  ;;  %v830_v27 = vadd.f32 %v829_v39, %v828_v23  ;;  %v847_v13 = vrot.slane %v846_v38, 4  ;;  %1610 = vrcp.f32 %v2319_v29 }
  0xcf   : > { %v824_v24 = vrot.slane %v823_v9, 1  ;;  %v954_v61 = vadd.f32 %v945_v4, %v942_v3  ;;  %v961_v5 = vadd.f32 %v946_v36, %v943_v59  ;;  %1612 = vrcp.f32 %v2323_v37 }
  0xd0   : > { %v2348_v21 = vadd.f32 %v723_v32, %v2294_v58  ;;  %v736_v0 = vrot.slane %v2297_v63, 1  ;;  %v2352_v7 = vadd.f32 %v748_v54, %v2287_v2  ;;  %1614 = vrcp.f32 %v2332_v47 }
  0xd1   : > { %v842_v60 = vrot.slane %v841_v8, 2  ;;  %v854_v31 = vrot.slane %v853_v34, 4  ;;  %v948_v56 = vrot.slane %v947_v20, 4  ;;  %1616 = vrcp.f32 %v2341_v33 }
  0xd2   : > { %v1599_v48 = vpop.eup %1598  ;;  %v2356_v10 = vadd.f32 %v817_v14, %v816_v62  ;;  %v831_v57 = vrot.slane %v830_v27, 1  ;;  %v848_v6 = vadd.f32 %v847_v13, %v846_v38  ;;  %v2358_v58 = vadd.f32 %v824_v24, %v823_v9 }
  0xd3   : > { %v1601_v50 = vpop.eup %1600  ;;  %v955_v18 = vrot.slane %v954_v61, 4  ;;  %v962_v53 = vrot.slane %v961_v5, 4  ;;  %v2361_v2 = vadd.f32 %v736_v0, %v2297_v63  ;;  %v743_v55 = vrot.slane %v2338_v40, 1 }
  0xd4   : > { %v1603_v23 = vpop.eup %1602  ;;  %1618 = vrcp.f32 %v2348_v21  ;;  %v750_v28 = vrot.slane %v2352_v7, 1  ;;  %v2366_v16 = vadd.f32 %v842_v60, %v841_v8  ;;  %v2368_v19 = vadd.f32 %v854_v31, %v853_v34 }
  0xd5   : > { %v1605_v11 = vpop.eup %1604  ;;  %v949_v25 = vadd.f32 %v948_v56, %v947_v20  ;;  %v2370_v1 = vadd.f32 %v831_v57, %v830_v27  ;;  %v849_v49 = vrot.slane %v848_v6, 2  ;;  %1620 = vrcp.f32 %v2356_v10 }
  0xd6   : > { %v1607_v51 = vpop.eup %1606  ;;  %v1028_v63 = vadd.f32 %v1605_v11, %v1599_v48  ;;  %1622 = vrcp.f32 %v2358_v58  ;;  %v956_v52 = vadd.f32 %v955_v18, %v954_v61  ;;  %v963_v62 = vadd.f32 %v962_v53, %v961_v5 }
  0xd7   : > { %v1609_v15 = vpop.eup %1608  ;;  %v1035_v39 = vadd.f32 %v1607_v51, %v1601_v50  ;;  %v1049_v41 = vmul.f32 %v1599_v48, %v2223_v17  ;;  %v1052_v12 = vmul.f32 %v1605_v11, %v2238_v46  ;;  %v950_v9 = vrot.slane %v949_v25, 2 }
  0xd8   : > { %v1029_v38 = vrot.slane %v1028_v63, 4  ;;  %v1042_v44 = vadd.f32 %v1609_v15, %v1603_v23  ;;  %v1050_v59 = vmul.f32 %v1601_v50, %v2223_v17  ;;  %v1053_v4 = vmul.f32 %v1607_v51, %v2238_v46 }
  0xd9   : > { %v1036_v3 = vrot.slane %v1035_v39, 4  ;;  %v1051_v54 = vmul.f32 %v1603_v23, %v2223_v17  ;;  %v1054_v8 = vmul.f32 %v1609_v15, %v2238_v46  ;;  %v2382_v20 = vmul.f32 %v2343_v45, %v2292_v42 }
  0xda   : > { %v1030_v36 = vadd.f32 %v1029_v38, %v1028_v63  ;;  %v1043_v32 = vrot.slane %v1042_v44, 4  ;;  %v856_v14 = vrot.slane %v2368_v19, 2  ;;  %v957_v27 = vrot.slane %v956_v52, 2 }
  0xdb   : > { %v1611_v34 = vpop.eup %1610  ;;  %v1037_v13 = vadd.f32 %v1036_v3, %v1035_v39  ;;  %v2385_v61 = vadd.f32 %v849_v49, %v848_v6  ;;  %v1055_v60 = vadd.f32 %v1052_v12, %v1049_v41  ;;  %1624 = vrcp.f32 %v2370_v1 }
  0xdc   : > { %v1613_v24 = vpop.eup %1612  ;;  %v1031_v5 = vrot.slane %v1030_v36, 2  ;;  %v1044_v0 = vadd.f32 %v1043_v32, %v1042_v44  ;;  %v964_v17 = vrot.slane %v963_v62, 2  ;;  %v1062_v56 = vadd.f32 %v1053_v4, %v1050_v59 }
  0xdd   : > { %v2387_v31 = vpop.eup %1614  ;;  %v1038_v46 = vrot.slane %v1037_v13, 2  ;;  %v951_v42 = vadd.f32 %v950_v9, %v949_v25  ;;  %v1069_v18 = vadd.f32 %v1054_v8, %v1051_v54  ;;  %v958_v53 = vadd.f32 %v957_v27, %v956_v52 }
  0xde   : > { %v1617_v48 = vpop.eup %1616  ;;  %v1032_v57 = vadd.f32 %v1031_v5, %v1030_v36  ;;  %v1045_v50 = vrot.slane %v1044_v0, 2  ;;  %v971_v23 = vmul.f32 %v1611_v34, %v2319_v29  ;;  %v972_v6 = vmul.f32 %v1613_v24, %v2323_v37 }
  0xdf   : > { %v1039_v11 = vadd.f32 %v1038_v46, %v1037_v13  ;;  %v756_v51 = vmul.f32 %v2387_v31, %v2332_v47  ;;  %v1056_v15 = vrot.slane %v1055_v60, 4  ;;  %v965_v38 = vadd.f32 %v964_v17, %v963_v62 }
  0xe0   : > { %v1033_v49 = vrot.slane %v1032_v57, 1  ;;  %v1046_v63 = vadd.f32 %v1045_v50, %v1044_v0  ;;  %v973_v44 = vmul.f32 %v1617_v48, %v2341_v33  ;;  %v1063_v41 = vrot.slane %v1062_v56, 4 }
  0xe1   : > { %v1619_v39 = vpop.eup %1618  ;;  %v1040_v25 = vrot.slane %v1039_v11, 1  ;;  %v952_v12 = vrot.slane %v951_v42, 1  ;;  %v1070_v29 = vrot.slane %v1069_v18, 4  ;;  %v959_v37 = vrot.slane %v958_v53, 1 }
  0xe2   : > { %v2395_v9 = vadd.f32 %v1033_v49, %v1032_v57  ;;  %v1047_v52 = vrot.slane %v1046_v63, 1  ;;  %v2397_v3 = vpop.eup %1620  ;;  %v974_v59 = vsub.f32 2.0, %v971_v23  ;;  %v975_v4 = vsub.f32 2.0, %v972_v6 }
  0xe3   : > { %v2399_v47 = vadd.f32 %v1040_v25, %v1039_v11  ;;  %v2401_v36 = vpop.eup %1622  ;;  %v757_v62 = vmul.f32 %v1619_v39, %v2348_v21  ;;  %v1057_v33 = vadd.f32 %v1056_v15, %v1055_v60  ;;  %v966_v54 = vrot.slane %v965_v38, 1 }
  0xe4   : > { %v2404_v32 = vadd.f32 %v1047_v52, %v1046_v63  ;;  %1626 = vrcp.f32 %v2395_v9  ;;  %v976_v8 = vsub.f32 2.0, %v973_v44  ;;  %v1064_v27 = vadd.f32 %v1063_v41, %v1062_v56 }
  0xe5   : > { %1628 = vrcp.f32 %v2399_v47  ;;  %v758_v13 = vsub.f32 2.0, %v2382_v20  ;;  %v759_v5 = vsub.f32 2.0, %v756_v51  ;;  %v1071_v0 = vadd.f32 %v1070_v29, %v1069_v18 }
  0xe6   : > { %1630 = vrcp.f32 %v2404_v32  ;;  %v953_v17 = vadd.f32 %v952_v12, %v951_v42  ;;  %v960_v46 = vadd.f32 %v959_v37, %v958_v53  ;;  %v977_v57 = vmul.f32 %v1611_v34, %v974_v59 }
  0xe7   : > { %v978_v21 = vmul.f32 %v1613_v24, %v975_v4  ;;  %v760_v50 = vsub.f32 2.0, %v757_v62  ;;  %v844_v60 = vrot.slane %v2366_v16, 1  ;;  %v857_v23 = vadd.f32 %v856_v14, %v2368_v19 }
  0xe8   : > { %v1058_v6 = vrot.slane %v1057_v33, 2  ;;  %v863_v56 = vmul.f32 %v2397_v3, %v2356_v10  ;;  %v967_v20 = vadd.f32 %v966_v54, %v965_v38  ;;  %v979_v11 = vmul.f32 %v1617_v48, %v976_v8  ;;  %v1625_v42 = vpop.eup %1624 }
  0xe9   : > { %v1065_v18 = vrot.slane %v1064_v27, 2  ;;  %v744_v34 = vadd.f32 %v743_v55, %v2338_v40  ;;  %v851_v24 = vrot.slane %v2385_v61, 1  ;;  %v864_v19 = vmul.f32 %v2401_v36, %v2358_v58 }
  0xea   : > { %v1072_v14 = vrot.slane %v1071_v0, 2  ;;  %v761_v53 = vmul.f32 %v2343_v45, %v758_v13  ;;  %v762_v10 = vmul.f32 %v2387_v31, %v759_v5  ;;  %v2426_v51 = vmul.f32 %v977_v57, %v953_v17 }
  0xeb   : > { %v2428_v48 = vmul.f32 %v978_v21, %v960_v46  ;;  %v751_v49 = vadd.f32 %v750_v28, %v2352_v7  ;;  %v763_v63 = vmul.f32 %v1619_v39, %v760_v50  ;;  %v858_v40 = vrot.slane %v857_v23, 1 }
  0xec   : > { %v1059_v55 = vadd.f32 %v1058_v6, %v1057_v33  ;;  %v845_v58 = vadd.f32 %v844_v60, %v2366_v16  ;;  %v866_v15 = vsub.f32 2.0, %v863_v56  ;;  %v2436_v45 = vmul.f32 %v979_v11, %v967_v20 }
  0xed   : > { %v1066_v31 = vadd.f32 %v1065_v18, %v1064_v27  ;;  %v852_v38 = vadd.f32 %v851_v24, %v2385_v61  ;;  %v865_v44 = vmul.f32 %v1625_v42, %v2370_v1  ;;  %v867_v7 = vsub.f32 2.0, %v864_v19 }
  0xee   : > { %v1073_v28 = vadd.f32 %v1072_v14, %v1071_v0  ;;  %v764_v39 = vmul.f32 %v761_v53, %v2361_v2  ;;  %v765_v25 = vmul.f32 %v762_v10, %v744_v34  ;;  %v1091_v41 = vmul.f32 0.5, %v2426_v51 }
  0xef   : > { %v1092_v16 = vmul.f32 0.5, %v2428_v48  ;;  %v766_v12 = vmul.f32 %v763_v63, %v751_v49  ;;  %v859_v52 = vadd.f32 %v858_v40, %v857_v23  ;;  %v1060_v29 = vrot.slane %v1059_v55, 1 }
  0xf0   : > { %v1113_v37 = vstv %s2412_s7  ;;  %v869_v1 = vmul.f32 %v2397_v3, %v866_v15  ;;  %v1067_v61 = vrot.slane %v1066_v31, 1  ;;  %v1093_v4 = vmul.f32 0.5, %v2436_v45 }
  0xf1   : > { %v1627_v59 = vpop.eup %1626  ;;  %v1117_v2 = vstv %s2416_s11  ;;  %v868_v33 = vsub.f32 2.0, %v865_v44  ;;  %v870_v54 = vmul.f32 %v2401_v36, %v867_v7  ;;  %v1074_v8 = vrot.slane %v1073_v28, 1 }
  0xf2   : > { %v1629_v62 = vpop.eup %1628  ;;  %v1079_v27 = vmul.f32 %v1627_v59, %v2395_v9  ;;  %v1094_v0 = vsub.f32 %v764_v39, %v1091_v41  ;;  %v1095_v17 = vsub.f32 %v765_v25, %v1092_v16  ;;  %v1103_v46 = vadd.f32 %v1091_v41, %v764_v39 }
  0xf3   : > { %v1631_v13 = vpop.eup %1630  ;;  %v1080_v5 = vmul.f32 %v1629_v62, %v2399_v47  ;;  %v1061_v3 = vadd.f32 %v1060_v29, %v1059_v55  ;;  %v1104_v50 = vadd.f32 %v1092_v16, %v765_v25  ;;  %v1068_v60 = vadd.f32 %v1067_v61, %v1066_v31 }
  0xf4   : > { %v1081_v57 = vmul.f32 %v1631_v13, %v2404_v32  ;;  %v1082_v21 = vsub.f32 2.0, %v1079_v27  ;;  %v1096_v6 = vsub.f32 %v766_v12, %v1093_v4  ;;  %v1105_v36 = vadd.f32 %v1093_v4, %v766_v12 }
  0xf5   : > { %v1083_v23 = vsub.f32 2.0, %v1080_v5  ;;  %v871_v56 = vmul.f32 %v1625_v42, %v868_v33  ;;  %v1075_v20 = vadd.f32 %v1074_v8, %v1073_v28  ;;  %v872_v18 = vmul.f32 %v869_v1, %v845_v58 }
  0xf6   : > { %v1084_v9 = vsub.f32 2.0, %v1081_v57  ;;  %v1085_v11 = vmul.f32 %v1627_v59, %v1082_v21  ;;  %v1114_v34 = vmin.f32 %v1103_v46, %v1113_v37  ;;  %v1118_v24 = vmax.f32 %v1094_v0, %v1117_v2 }
  0xf7   : > { %v1086_v47 = vmul.f32 %v1629_v62, %v1083_v23  ;;  %v1115_v32 = vmin.f32 %v1104_v50, %v1113_v37  ;;  %v1119_v53 = vmax.f32 %v1095_v17, %v1117_v2  ;;  %v873_v10 = vmul.f32 %v870_v54, %v852_v38 }
  0xf8   : > { %v1087_v19 = vmul.f32 %v1631_v13, %v1084_v9  ;;  %v1088_v14 = vmul.f32 %v1085_v11, %v1061_v3  ;;  %v1116_v63 = vmin.f32 %v1105_v36, %v1113_v37  ;;  %v1120_v40 = vmax.f32 %v1096_v6, %v1117_v2 }
  0xf9   : > { %v1089_v49 = vmul.f32 %v1086_v47, %v1068_v60  ;;  %v874_v55 = vmul.f32 %v871_v56, %v859_v52  ;;  %v1127_v31 = vstv %s2438_s12  ;;  %v1121_v58 = vsub.f32 %v1114_v34, %v1118_v24 }
  0xfa   : > { %v1090_v42 = vmul.f32 %v1087_v19, %v1075_v20  ;;  %v1097_v15 = vmul.f32 0.5, %v1088_v14  ;;  %v1131_v7 = vstv %s2433_s24  ;;  %v1150_v28 = vstv %s1149_s22 }
  0xfb   : > { %v1098_v44 = vmul.f32 0.5, %v1089_v49  ;;  %v1122_v16 = vsub.f32 %v1115_v32, %v1119_v53  ;;  %v1123_v59 = vsub.f32 %v1116_v63, %v1120_v40  ;;  %v1144_v38 = vmul.f32 %v1088_v14, %v2426_v51 }
  0xfc   : > { %v1099_v39 = vmul.f32 0.5, %v1090_v42  ;;  %v1100_v25 = vsub.f32 %v872_v18, %v1097_v15  ;;  %v1106_v41 = vadd.f32 %v1097_v15, %v872_v18  ;;  %v1124_v4 = vmax.f32 %v1121_v58, 0.0 }
  0xfd   : > { %v1101_v12 = vsub.f32 %v873_v10, %v1098_v44  ;;  %v1107_v29 = vadd.f32 %v1098_v44, %v873_v10  ;;  %v1145_v33 = vmul.f32 %v1089_v49, %v2428_v48  ;;  %v1146_v13 = vmul.f32 %v1090_v42, %v2436_v45 }
  0xfe   : > { %v1102_v1 = vsub.f32 %v874_v55, %v1099_v39  ;;  %v1108_v37 = vadd.f32 %v1099_v39, %v874_v55  ;;  %v1128_v61 = vmin.f32 %v1106_v41, %v1127_v31  ;;  %v1132_v52 = vmax.f32 %v1100_v25, %v1131_v7 }
  0xff   : > { %v1129_v2 = vmin.f32 %v1107_v29, %v1127_v31  ;;  %v1133_v62 = vmax.f32 %v1101_v12, %v1131_v7  ;;  %v1125_v5 = vmax.f32 %v1122_v16, 0.0  ;;  %v1126_v17 = vmax.f32 %v1123_v59, 0.0 }
 0x100   : > { %v1130_v54 = vmin.f32 %v1108_v37, %v1127_v31  ;;  %v1134_v8 = vmax.f32 %v1102_v1, %v1131_v7  ;;  %v1135_v27 = vsub.f32 %v1128_v61, %v1132_v52  ;;  %v1151_v51 = vadd.f32 %v1150_v28, %v1144_v38  ;;  %v1351_v37 = vld [vmem:[%s1927_s25 + $0x18] ss:$8 sm:$0x7] }
 0x101   : > { %v1136_v0 = vsub.f32 %v1129_v2, %v1133_v62  ;;  %v1152_v21 = vadd.f32 %v1150_v28, %v1145_v33  ;;  %v1153_v23 = vadd.f32 %v1150_v28, %v1146_v13  ;;  %v1768_v53 = vmov 1966171168  }
 0x102   : > { %v1137_v46 = vsub.f32 %v1130_v54, %v1134_v8  ;;  %v1138_v3 = vmax.f32 %v1135_v27, 0.0  ;;  %v1188_v10 = vunpack.c.l.s4 %v1768_v53 }
 0x103   : > { %v1139_v57 = vmax.f32 %v1136_v0, 0.0 }
 0x104   : > { %v1140_v50 = vmax.f32 %v1137_v46, 0.0  ;;  %v1141_v60 = vmul.f32 %v1138_v3, %v1124_v4  ;;  %v1189_v31 = vunpack.c.0.s8 %v1188_v10 }
 0x105   : > { %v1142_v6 = vmul.f32 %v1139_v57, %v1125_v5 }
 0x106   : > { %v1143_v36 = vmul.f32 %v1140_v50, %v1126_v17  ;;  %v1154_v56 = vsub.f32 %v1151_v51, %v1141_v60  ;;  %v1192_v41 = vsub.s32 %v1189_v31, %v2106_v43 }
 0x107   : > { %v1155_v48 = vsub.f32 %v1152_v21, %v1142_v6 }
 0x108   : > { %v1156_v20 = vsub.f32 %v1153_v23, %v1143_v36  ;;  %v1157_v9 = vadd.f32 1e-07, %v1154_v56 }
 0x109   : > { %v1158_v11 = vadd.f32 1e-07, %v1155_v48 }
 0x10a   : > { %v1159_v18 = vadd.f32 1e-07, %v1156_v20  ;;  %1632 = vrcp.f32 %v1157_v9 }
 0x10b   : > { %1634 = vrcp.f32 %v1158_v11 }
 0x10c   : > { %1636 = vrcp.f32 %v1159_v18 }
 0x117   : > { %v1633_v45 = vpop.eup %1632 }
 0x118   : > { %v1635_v47 = vpop.eup %1634  ;;  %v1163_v34 = vmul.f32 %v1633_v45, %v1157_v9 }
 0x119   : > { %v1637_v24 = vpop.eup %1636  ;;  %v1164_v19 = vmul.f32 %v1635_v47, %v1158_v11 }
 0x11a   : > { %v1165_v14 = vmul.f32 %v1637_v24, %v1159_v18  ;;  %v1166_v32 = vsub.f32 2.0, %v1163_v34 }
 0x11b   : > { %v1167_v49 = vsub.f32 2.0, %v1164_v19 }
 0x11c   : > { %v1168_v63 = vsub.f32 2.0, %v1165_v14  ;;  %v1169_v40 = vmul.f32 %v1633_v45, %v1166_v32 }
 0x11d   : > { %v1170_v55 = vmul.f32 %v1635_v47, %v1167_v49 }
 0x11e   : > { %v1171_v42 = vmul.f32 %v1637_v24, %v1168_v63  ;;  %v1172_v15 = vmul.f32 %v1169_v40, %v1141_v60 }
 0x11f   : > { %v1173_v44 = vmul.f32 %v1170_v55, %v1142_v6 }
 0x120   : > { %v1174_v58 = vmul.f32 %v1171_v42, %v1143_v36  ;;  %v1177_v7 = vsub.f32 1.0, %v1172_v15 }
 0x121   : > { %v1178_v28 = vsub.f32 1.0, %v1173_v44 }
 0x122   : > { %v1179_v39 = vsub.f32 1.0, %v1174_v58  ;;  %v1180_v25 = vmul.f32 %v1177_v7, %v2127_v30 }
 0x123   : > { %v1181_v16 = vmul.f32 %v1178_v28, %v2130_v22 }
 0x124   : > { %v1182_v12 = vmul.f32 %v1179_v39, %v2167_v26 }
 0x125   : > { %v1186_v29 = vcombine.low %v1180_v25, %v1181_v16 }
 0x126   : > { %v1200_v59 = vrot.slane %v1182_v12, %v1192_v41 }
 0x127   : > { %v1193_v38 = vrot.slane %v1186_v29, %v1192_v41 }
 0x129   : > { %v1201_v1 = vcombine.low %v1193_v38, %v1200_v59 }
 0x12b   : > { %v1208_v61 = vrot.slane %v1201_v1, %v1192_v41 }
 0x12d   : > { %v1210_v43 = vadd.f32 %v1351_v37, %v1208_v61 }
 0x12f   : > { %1352 = vst.msk [vmem:[%s1927_s25 + $0x18] ss:$8 sm:$0x7] %vm2198_vm0, %v1210_v43 }
 0x130   : > { %1690 = shalt.err (!%p1687_p5)
}
 0x131   : > { %s1691_s25 = scalar_lea.hbm %s2472_s16, 768  ;;  %s1695_s24 = scalar_lea.hbm %s2529_s4, 1536 }
 0x132   : > { %p1692_p10 = scmp.ne.s32.totalorder %s2472_s16, %s1691_s25  ;;  %p1696_p0 = scmp.lt.s32.totalorder %s2472_s16, %s2529_s4 }
 0x133   : > { %p1697_p4 = scmp.lt.s32.totalorder %s1695_s24, %s1691_s25 }
 0x134   : > { %p1693_p11 = pnand %p1692_p10, %p1848_p8 }
 0x135   : > { %p1698_p6 = por %p1697_p4, %p1696_p0 }
 0x136   : > { %p1694_p1 = pneg %p1693_p11 }
 0x138   : > { %p1699_p3 = pnand %p1698_p6, %p1694_p1 }
 0x13a   : > { %1702 = shalt.err (!%p1699_p3)
}
 0x13b   : > { %s1770_s15 = smov 384   ;;  %s1771_s22 = smov 24  }
 0x13c   : > { %1367 = dma.vmem_to_hbm [thread:$0]  (%p1848_p8), %s2474_s29, 768, %s2472_s16, %s1214_s0, %s1770_s15, %s1770_s15, %s1771_s22  }
 0x13d PF: > { %s2543_s26 = sld [smem:[#allocation12_spill]]  ;;  %s1242_s5 = sand.u32 1, %s1741_s17  }
 0x13e   : > { %p2544_p7 = scmp.ne.s32.totalorder %s2536_s28, 0  ;;  %s1243_s14 = scalar_lea.sflag [#allocation5], %s1242_s5 }
 0x143   : > { %p2545_p9 = scmp.ge.s32.totalorder %s2543_s26, 2 }
 0x145   : > { %p1378_p12 = pnand %p2545_p9, %p2544_p7 }
 0x147   : > { %p1379_p13 = pneg %p1378_p12 }
 0x149   : > { %1736 = dma.done.wait (%p1379_p13), %s1243_s14, 768  }
 0x14a   : > { %1738 = vsyncadd (%p1379_p13), %s1243_s14, 4294966528  ;;  %s22_s22 = sadd.s32 1, %s2543_s26   ;;  %s2546_s17 = smov %s1745_s18 }
 0x14b   : > { %p19_p2 = scmp.ge.s32.totalorder %s22_s22, 4   ;;  %s2547_s18 = smov %s1749_s19 }
 0x14c   : > { %s2548_s19 = smov %s1888_s23  ;;  %s2549_s20 = smov %s1757_s21 }
 0x14d   : > { %s2550_s21 = smov %s2552_s6  ;;  %21 = sbr.rel (!%p19_p2) target bundleno = 9 (0x9), region = 95 }
 0x152   :  { %1248 = vsyncpa [#allocation4], 1 }
 0x153   :  { %1250 = vsyncpa [#allocation4 + $0x1], 1 }
 0x154   :  { %1251 = vsyncpa [#allocation5], 1 }
 0x155   :  { %1253 = vsyncpa [#allocation5 + $0x1], 1 }
 0x156   :  { %1254 = vsyncpa [#allocation6], 1 }
 0x157   :  { %1256 = vsyncpa [#allocation6 + $0x1], 1 }

</bundles_post_ra>
